<compile_context>
chip_gen: v6e
topology: v6e:2x2x1
jax: 0.10.0
libtpu: 0.0.40
codegen_flags: <defaults>
</compile_context>

<pallas_src>
import functools

import jax
import jax.numpy as jnp
from jax import lax
from jax.experimental import pallas as pl
from jax.experimental.pallas import tpu as pltpu


def _lstm_mlp_kernel(x_ref,                      # (T*B, I)   time-major, flattened
                     w_ih0_ref, w_hh0_ref, b0_ref,   # (I,4H) (H,4H) (1,4H)
                     w1_ref, b1_ref,                 # (2H,4H) stacked [w_ih1; w_hh1], (1,4H)
                     bn_scale_ref, bn_shift_ref,     # (1,H) (1,H)
                     fc1_w_ref, fc1_b_ref,           # (H,H2) (1,H2)
                     fc2_w_ref, fc2_b_ref,           # (H2,O_pad) (1,O_pad)
                     o_ref,                          # (B, O_pad)
                     *, hidden_size, seq_len, batch):
    H = hidden_size
    T = seq_len
    B = batch

    # --- Hoisted layer-0 input projection: one batched matmul, bias folded. ---
    xproj = (jnp.dot(x_ref[...], w_ih0_ref[...],
                     preferred_element_type=jnp.float32)
             + b0_ref[...])                                   # (T*B, 4H)

    w_hh0 = w_hh0_ref[...]                                    # (H, 4H)
    w1 = w1_ref[...]                                          # (2H, 4H)
    # Hoist the layer-1 bias broadcast out of the recurrence.
    b1b = jnp.broadcast_to(b1_ref[...], (B, 4 * H))           # (B, 4H)

    # Lane mask selecting the g-gate (third quarter) of the 4H gate vector,
    # built once outside the loop.
    lane = lax.broadcasted_iota(jnp.int32, (B, 4 * H), 1)
    g_mask = (lane >= 2 * H) & (lane < 3 * H)

    def activate(gates):
        # Whole-vreg EUP ops: sigmoid everywhere, tanh only on g-gate lanes.
        return jnp.where(g_mask, jnp.tanh(gates), jax.nn.sigmoid(gates))

    def combine(act, c):
        i = act[:, 0 * H:1 * H]
        f = act[:, 1 * H:2 * H]
        g = act[:, 2 * H:3 * H]
        o = act[:, 3 * H:4 * H]
        c_new = f * c + i * g
        h_new = o * jnp.tanh(c_new)
        return h_new, c_new

    zeros = jnp.zeros((B, H), jnp.float32)
    h0, c0, h1, c1 = zeros, zeros, zeros, zeros

    # T is small and static: fully unroll so MXU/EUP/VPU work overlaps across
    # steps and all xproj slices are static.
    for t in range(T):
        # Layer 0: input projection precomputed; one dot on the hidden state.
        gates0 = xproj[t * B:(t + 1) * B, :] + jnp.dot(
            h0, w_hh0, preferred_element_type=jnp.float32)
        h0, c0 = combine(activate(gates0), c0)
        # Layer 1: single fused dot on [h0_t, h1_{t-1}] (inter-layer dropout
        # is identity at inference).
        hcat = jnp.concatenate([h0, h1], axis=1)              # (B, 2H)
        gates1 = jnp.dot(hcat, w1,
                         preferred_element_type=jnp.float32) + b1b
        h1, c1 = combine(activate(gates1), c1)

    # BatchNorm1d (eval mode, folded to scale/shift) on the last hidden state.
    out = h1 * bn_scale_ref[...] + bn_shift_ref[...]
    # fc1 -> ReLU
    out = jnp.dot(out, fc1_w_ref[...],
                  preferred_element_type=jnp.float32) + fc1_b_ref[...]
    out = jnp.maximum(out, 0.0)
    # fc2 (lane-padded) -> sigmoid; padded lanes are sliced off in the wrapper.
    out = jnp.dot(out, fc2_w_ref[...],
                  preferred_element_type=jnp.float32) + fc2_b_ref[...]
    o_ref[...] = jax.nn.sigmoid(out).astype(o_ref.dtype)


def enhanced_arc_quality_rnn_forward(x, params, hidden_size):
    """x: (B, T, I) float32 (PyTorch batch_first layout). Returns (B, output_size)."""
    B, T, I = x.shape
    H = hidden_size
    H2 = params["fc1_w"].shape[1]
    output_size = params["fc2_w"].shape[1]

    # Pad batch to full sublanes and the fc2 output to a full 128-lane slab so
    # the in-kernel vregs and the output store are dense.
    B_pad = max(8, ((B + 7) // 8) * 8)
    O_pad = 128

    x_p = jnp.zeros((B_pad, T, I), jnp.float32).at[:B].set(x)
    # Time-major + flattened: each timestep is one contiguous (B_pad, 4H) slab
    # of the hoisted input projection, statically sliceable in the unrolled loop.
    x_tm = jnp.transpose(x_p, (1, 0, 2)).reshape(T * B_pad, I)

    # Stack layer-1 weights so the per-step layer-1 gates are a single dot.
    w1 = jnp.concatenate([params["w_ih1"], params["w_hh1"]], axis=0)    # (2H, 4H)
    fc2_w = jnp.zeros((H2, O_pad), jnp.float32).at[:, :output_size].set(params["fc2_w"])
    fc2_b = jnp.zeros((1, O_pad), jnp.float32).at[:, :output_size].set(params["fc2_b"])

    inputs = (
        x_tm,
        params["w_ih0"], params["w_hh0"], params["b0"],
        w1, params["b1"],
        params["bn_scale"], params["bn_shift"],
        params["fc1_w"], params["fc1_b"],
        fc2_w, fc2_b,
    )

    vmem_spec = pl.BlockSpec(memory_space=pltpu.MemorySpace.VMEM)
    kernel = functools.partial(_lstm_mlp_kernel, hidden_size=H,
                               seq_len=T, batch=B_pad)

    out = pl.pallas_call(
        kernel,
        out_shape=jax.ShapeDtypeStruct((B_pad, O_pad), jnp.float32),
        in_specs=[vmem_spec] * len(inputs),
        out_specs=vmem_spec,
    )(*inputs)
    return out[:B, :output_size]


def init_params(key, input_size, hidden_size, output_size):
    """Deterministic synthetic parameters (shapes match the PyTorch module)."""
    H = hidden_size
    ks = jax.random.split(key, 10)
    bound = 1.0 / jnp.sqrt(jnp.float32(H))

    def u(k, shape, b):
        return jax.random.uniform(k, shape, jnp.float32, -b, b)

    params = {
        # layer 0: x (I) -> gates (4H); stored as (in, 4H) for right-multiply
        "w_ih0": u(ks[0], (input_size, 4 * H), bound),
        "w_hh0": u(ks[1], (H, 4 * H), bound),
        "b0":    u(ks[2], (1, 4 * H), bound),     # b_ih + b_hh combined
        # layer 1: h0 (H) -> gates (4H)
        "w_ih1": u(ks[3], (H, 4 * H), bound),
        "w_hh1": u(ks[4], (H, 4 * H), bound),
        "b1":    u(ks[5], (1, 4 * H), bound),
        # BatchNorm1d(H) eval mode: gamma=1, beta=0, running_mean=0, running_var=1
        "bn_scale": jnp.full((1, H), 1.0 / jnp.sqrt(1.0 + 1e-5), jnp.float32),
        "bn_shift": jnp.zeros((1, H), jnp.float32),
        # fc1: H -> H//2
        "fc1_w": u(ks[6], (H, H // 2), 1.0 / jnp.sqrt(jnp.float32(H))),
        "fc1_b": u(ks[7], (1, H // 2), 1.0 / jnp.sqrt(jnp.float32(H))),
        # fc2: H//2 -> output_size
        "fc2_w": u(ks[8], (H // 2, output_size), 1.0 / jnp.sqrt(jnp.float32(H // 2))),
        "fc2_b": u(ks[9], (1, output_size), 1.0 / jnp.sqrt(jnp.float32(H // 2))),
    }
    return params


def reference_forward(x, params, hidden_size):
    """Pure-JAX reference for a sanity check."""
    H = hidden_size
    B, T, _ = x.shape

    def cell(xt, h, c, w_ih, w_hh, b):
        gates = xt @ w_ih + h @ w_hh + b
        i = jax.nn.sigmoid(gates[:, 0 * H:1 * H])
        f = jax.nn.sigmoid(gates[:, 1 * H:2 * H])
        g = jnp.tanh(gates[:, 2 * H:3 * H])
        o = jax.nn.sigmoid(gates[:, 3 * H:4 * H])
        c = f * c + i * g
        return o * jnp.tanh(c), c

    h0 = c0 = h1 = c1 = jnp.zeros((B, H), jnp.float32)
    for t in range(T):
        h0, c0 = cell(x[:, t, :], h0, c0, params["w_ih0"], params["w_hh0"], params["b0"])
        h1, c1 = cell(h0, h1, c1, params["w_ih1"], params["w_hh1"], params["b1"])
    out = h1 * params["bn_scale"] + params["bn_shift"]
    out = jnp.maximum(out @ params["fc1_w"] + params["fc1_b"], 0.0)
    return jax.nn.sigmoid(out @ params["fc2_w"] + params["fc2_b"])


if __name__ == "__main__":
    batch, seq_len = 2, 8
    input_size, hidden_size, output_size = 4, 32, 1

    key = jax.random.PRNGKey(0)
    k_x, k_p = jax.random.split(key)
    x = jax.random.normal(k_x, (batch, seq_len, input_size), jnp.float32)
    params = init_params(k_p, input_size, hidden_size, output_size)

    out = enhanced_arc_quality_rnn_forward(x, params, hidden_size)
    out = jax.block_until_ready(out)

    ref = reference_forward(x, params, hidden_size)
    assert out.shape == (batch, output_size)
    assert jnp.max(jnp.abs(out - ref)) < 1e-4, "kernel/reference mismatch"

    print("KERNEL_OK")
</pallas_src>

<mosaic_0001>
module attributes {stable_mosaic.version = 11 : i64} {
  func.func @_lstm_mlp_kernel(%arg0: memref<64x4xf32, #tpu.memory_space<vmem>>, %arg1: memref<4x128xf32, #tpu.memory_space<vmem>>, %arg2: memref<32x128xf32, #tpu.memory_space<vmem>>, %arg3: memref<1x128xf32, #tpu.memory_space<vmem>>, %arg4: memref<64x128xf32, #tpu.memory_space<vmem>>, %arg5: memref<1x128xf32, #tpu.memory_space<vmem>>, %arg6: memref<1x32xf32, #tpu.memory_space<vmem>>, %arg7: memref<1x32xf32, #tpu.memory_space<vmem>>, %arg8: memref<32x16xf32, #tpu.memory_space<vmem>>, %arg9: memref<1x16xf32, #tpu.memory_space<vmem>>, %arg10: memref<16x128xf32, #tpu.memory_space<vmem>>, %arg11: memref<1x128xf32, #tpu.memory_space<vmem>>, %arg12: memref<8x128xf32, #tpu.memory_space<vmem>>) attributes {dimension_semantics = [], scalar_prefetch = 0 : i64, scratch_operands = 0 : i64, tpu.core_type = #tpu.core_type<tc>} {
    %c0 = arith.constant 0 : index
    %c0_0 = arith.constant 0 : index
    %0 = vector.load %arg0[%c0, %c0_0] : memref<64x4xf32, #tpu.memory_space<vmem>>, vector<64x4xf32>
    %c0_1 = arith.constant 0 : index
    %c0_2 = arith.constant 0 : index
    %1 = vector.load %arg1[%c0_1, %c0_2] : memref<4x128xf32, #tpu.memory_space<vmem>>, vector<4x128xf32>
    %cst = arith.constant dense<0.000000e+00> : vector<64x128xf32>
    %2 = tpu.matmul %0, %1, %cst {dimension_numbers = #tpu.dot_dimension_numbers<[1], [0], [0], [1], [0, 0, 1, 1], [], []>} : vector<64x4xf32>, vector<4x128xf32>, vector<64x128xf32> -> vector<64x128xf32>
    %c0_3 = arith.constant 0 : index
    %c0_4 = arith.constant 0 : index
    %3 = vector.load %arg3[%c0_3, %c0_4] : memref<1x128xf32, #tpu.memory_space<vmem>>, vector<1x128xf32>
    %4 = vector.broadcast %3 : vector<1x128xf32> to vector<64x128xf32>
    %5 = arith.addf %2, %4 : vector<64x128xf32>
    %c0_5 = arith.constant 0 : index
    %c0_6 = arith.constant 0 : index
    %6 = vector.load %arg2[%c0_5, %c0_6] : memref<32x128xf32, #tpu.memory_space<vmem>>, vector<32x128xf32>
    %c0_7 = arith.constant 0 : index
    %c0_8 = arith.constant 0 : index
    %7 = vector.load %arg4[%c0_7, %c0_8] : memref<64x128xf32, #tpu.memory_space<vmem>>, vector<64x128xf32>
    %c0_9 = arith.constant 0 : index
    %c0_10 = arith.constant 0 : index
    %8 = vector.load %arg5[%c0_9, %c0_10] : memref<1x128xf32, #tpu.memory_space<vmem>>, vector<1x128xf32>
    %9 = vector.shape_cast %8 : vector<1x128xf32> to vector<1x128xf32>
    %10 = vector.broadcast %9 : vector<1x128xf32> to vector<8x128xf32>
    %11 = tpu.iota {dimensions = array<i32: 1>} : vector<8x128xi32>
    %c64_i32 = arith.constant 64 : i32
    %12 = vector.broadcast %c64_i32 : i32 to vector<8x128xi32>
    %13 = arith.cmpi sge, %11, %12 : vector<8x128xi32>
    %c96_i32 = arith.constant 96 : i32
    %14 = vector.broadcast %c96_i32 : i32 to vector<8x128xi32>
    %15 = arith.cmpi slt, %11, %14 : vector<8x128xi32>
    %16 = arith.andi %13, %15 : vector<8x128xi1>
    %cst_11 = arith.constant 0.000000e+00 : f32
    %17 = vector.broadcast %cst_11 : f32 to vector<8x32xf32>
    %18 = vector.extract_strided_slice %5 {offsets = [0, 0], sizes = [8, 128], strides = [1, 1]} : vector<64x128xf32> to vector<8x128xf32>
    %cst_12 = arith.constant dense<0.000000e+00> : vector<8x128xf32>
    %19 = tpu.matmul %17, %6, %cst_12 {dimension_numbers = #tpu.dot_dimension_numbers<[1], [0], [0], [1], [0, 0, 1, 1], [], []>} : vector<8x32xf32>, vector<32x128xf32>, vector<8x128xf32> -> vector<8x128xf32>
    %20 = arith.addf %18, %19 : vector<8x128xf32>
    %21 = math.tanh %20 : vector<8x128xf32>
    %22 = arith.negf %20 : vector<8x128xf32>
    %23 = math.exp %22 : vector<8x128xf32>
    %cst_13 = arith.constant 1.000000e+00 : f32
    %24 = vector.broadcast %cst_13 : f32 to vector<8x128xf32>
    %25 = arith.addf %24, %23 : vector<8x128xf32>
    %26 = arith.divf %24, %25 : vector<8x128xf32>
    %27 = arith.select %16, %21, %26 : vector<8x128xi1>, vector<8x128xf32>
    %28 = vector.extract_strided_slice %27 {offsets = [0, 0], sizes = [8, 32], strides = [1, 1]} : vector<8x128xf32> to vector<8x32xf32>
    %29 = vector.extract_strided_slice %27 {offsets = [0, 32], sizes = [8, 32], strides = [1, 1]} : vector<8x128xf32> to vector<8x32xf32>
    %30 = vector.extract_strided_slice %27 {offsets = [0, 64], sizes = [8, 32], strides = [1, 1]} : vector<8x128xf32> to vector<8x32xf32>
    %31 = vector.extract_strided_slice %27 {offsets = [0, 96], sizes = [8, 32], strides = [1, 1]} : vector<8x128xf32> to vector<8x32xf32>
    %32 = arith.mulf %29, %17 : vector<8x32xf32>
    %33 = arith.mulf %28, %30 : vector<8x32xf32>
    %34 = arith.addf %32, %33 : vector<8x32xf32>
    %35 = math.tanh %34 : vector<8x32xf32>
    %36 = arith.mulf %31, %35 : vector<8x32xf32>
    %37 = tpu.concatenate %36, %17 in 1 : vector<8x32xf32>, vector<8x32xf32> -> vector<8x64xf32>
    %cst_14 = arith.constant dense<0.000000e+00> : vector<8x128xf32>
    %38 = tpu.matmul %37, %7, %cst_14 {dimension_numbers = #tpu.dot_dimension_numbers<[1], [0], [0], [1], [0, 0, 1, 1], [], []>} : vector<8x64xf32>, vector<64x128xf32>, vector<8x128xf32> -> vector<8x128xf32>
    %39 = arith.addf %38, %10 : vector<8x128xf32>
    %40 = math.tanh %39 : vector<8x128xf32>
    %41 = arith.negf %39 : vector<8x128xf32>
    %42 = math.exp %41 : vector<8x128xf32>
    %cst_15 = arith.constant 1.000000e+00 : f32
    %43 = vector.broadcast %cst_15 : f32 to vector<8x128xf32>
    %44 = arith.addf %43, %42 : vector<8x128xf32>
    %45 = arith.divf %43, %44 : vector<8x128xf32>
    %46 = arith.select %16, %40, %45 : vector<8x128xi1>, vector<8x128xf32>
    %47 = vector.extract_strided_slice %46 {offsets = [0, 0], sizes = [8, 32], strides = [1, 1]} : vector<8x128xf32> to vector<8x32xf32>
    %48 = vector.extract_strided_slice %46 {offsets = [0, 32], sizes = [8, 32], strides = [1, 1]} : vector<8x128xf32> to vector<8x32xf32>
    %49 = vector.extract_strided_slice %46 {offsets = [0, 64], sizes = [8, 32], strides = [1, 1]} : vector<8x128xf32> to vector<8x32xf32>
    %50 = vector.extract_strided_slice %46 {offsets = [0, 96], sizes = [8, 32], strides = [1, 1]} : vector<8x128xf32> to vector<8x32xf32>
    %51 = arith.mulf %48, %17 : vector<8x32xf32>
    %52 = arith.mulf %47, %49 : vector<8x32xf32>
    %53 = arith.addf %51, %52 : vector<8x32xf32>
    %54 = math.tanh %53 : vector<8x32xf32>
    %55 = arith.mulf %50, %54 : vector<8x32xf32>
    %56 = vector.extract_strided_slice %5 {offsets = [8, 0], sizes = [8, 128], strides = [1, 1]} : vector<64x128xf32> to vector<8x128xf32>
    %cst_16 = arith.constant dense<0.000000e+00> : vector<8x128xf32>
    %57 = tpu.matmul %36, %6, %cst_16 {dimension_numbers = #tpu.dot_dimension_numbers<[1], [0], [0], [1], [0, 0, 1, 1], [], []>} : vector<8x32xf32>, vector<32x128xf32>, vector<8x128xf32> -> vector<8x128xf32>
    %58 = arith.addf %56, %57 : vector<8x128xf32>
    %59 = math.tanh %58 : vector<8x128xf32>
    %60 = arith.negf %58 : vector<8x128xf32>
    %61 = math.exp %60 : vector<8x128xf32>
    %cst_17 = arith.constant 1.000000e+00 : f32
    %62 = vector.broadcast %cst_17 : f32 to vector<8x128xf32>
    %63 = arith.addf %62, %61 : vector<8x128xf32>
    %64 = arith.divf %62, %63 : vector<8x128xf32>
    %65 = arith.select %16, %59, %64 : vector<8x128xi1>, vector<8x128xf32>
    %66 = vector.extract_strided_slice %65 {offsets = [0, 0], sizes = [8, 32], strides = [1, 1]} : vector<8x128xf32> to vector<8x32xf32>
    %67 = vector.extract_strided_slice %65 {offsets = [0, 32], sizes = [8, 32], strides = [1, 1]} : vector<8x128xf32> to vector<8x32xf32>
    %68 = vector.extract_strided_slice %65 {offsets = [0, 64], sizes = [8, 32], strides = [1, 1]} : vector<8x128xf32> to vector<8x32xf32>
    %69 = vector.extract_strided_slice %65 {offsets = [0, 96], sizes = [8, 32], strides = [1, 1]} : vector<8x128xf32> to vector<8x32xf32>
    %70 = arith.mulf %67, %34 : vector<8x32xf32>
    %71 = arith.mulf %66, %68 : vector<8x32xf32>
    %72 = arith.addf %70, %71 : vector<8x32xf32>
    %73 = math.tanh %72 : vector<8x32xf32>
    %74 = arith.mulf %69, %73 : vector<8x32xf32>
    %75 = tpu.concatenate %74, %55 in 1 : vector<8x32xf32>, vector<8x32xf32> -> vector<8x64xf32>
    %cst_18 = arith.constant dense<0.000000e+00> : vector<8x128xf32>
    %76 = tpu.matmul %75, %7, %cst_18 {dimension_numbers = #tpu.dot_dimension_numbers<[1], [0], [0], [1], [0, 0, 1, 1], [], []>} : vector<8x64xf32>, vector<64x128xf32>, vector<8x128xf32> -> vector<8x128xf32>
    %77 = arith.addf %76, %10 : vector<8x128xf32>
    %78 = math.tanh %77 : vector<8x128xf32>
    %79 = arith.negf %77 : vector<8x128xf32>
    %80 = math.exp %79 : vector<8x128xf32>
    %cst_19 = arith.constant 1.000000e+00 : f32
    %81 = vector.broadcast %cst_19 : f32 to vector<8x128xf32>
    %82 = arith.addf %81, %80 : vector<8x128xf32>
    %83 = arith.divf %81, %82 : vector<8x128xf32>
    %84 = arith.select %16, %78, %83 : vector<8x128xi1>, vector<8x128xf32>
    %85 = vector.extract_strided_slice %84 {offsets = [0, 0], sizes = [8, 32], strides = [1, 1]} : vector<8x128xf32> to vector<8x32xf32>
    %86 = vector.extract_strided_slice %84 {offsets = [0, 32], sizes = [8, 32], strides = [1, 1]} : vector<8x128xf32> to vector<8x32xf32>
    %87 = vector.extract_strided_slice %84 {offsets = [0, 64], sizes = [8, 32], strides = [1, 1]} : vector<8x128xf32> to vector<8x32xf32>
    %88 = vector.extract_strided_slice %84 {offsets = [0, 96], sizes = [8, 32], strides = [1, 1]} : vector<8x128xf32> to vector<8x32xf32>
    %89 = arith.mulf %86, %53 : vector<8x32xf32>
    %90 = arith.mulf %85, %87 : vector<8x32xf32>
    %91 = arith.addf %89, %90 : vector<8x32xf32>
    %92 = math.tanh %91 : vector<8x32xf32>
    %93 = arith.mulf %88, %92 : vector<8x32xf32>
    %94 = vector.extract_strided_slice %5 {offsets = [16, 0], sizes = [8, 128], strides = [1, 1]} : vector<64x128xf32> to vector<8x128xf32>
    %cst_20 = arith.constant dense<0.000000e+00> : vector<8x128xf32>
    %95 = tpu.matmul %74, %6, %cst_20 {dimension_numbers = #tpu.dot_dimension_numbers<[1], [0], [0], [1], [0, 0, 1, 1], [], []>} : vector<8x32xf32>, vector<32x128xf32>, vector<8x128xf32> -> vector<8x128xf32>
    %96 = arith.addf %94, %95 : vector<8x128xf32>
    %97 = math.tanh %96 : vector<8x128xf32>
    %98 = arith.negf %96 : vector<8x128xf32>
    %99 = math.exp %98 : vector<8x128xf32>
    %cst_21 = arith.constant 1.000000e+00 : f32
    %100 = vector.broadcast %cst_21 : f32 to vector<8x128xf32>
    %101 = arith.addf %100, %99 : vector<8x128xf32>
    %102 = arith.divf %100, %101 : vector<8x128xf32>
    %103 = arith.select %16, %97, %102 : vector<8x128xi1>, vector<8x128xf32>
    %104 = vector.extract_strided_slice %103 {offsets = [0, 0], sizes = [8, 32], strides = [1, 1]} : vector<8x128xf32> to vector<8x32xf32>
    %105 = vector.extract_strided_slice %103 {offsets = [0, 32], sizes = [8, 32], strides = [1, 1]} : vector<8x128xf32> to vector<8x32xf32>
    %106 = vector.extract_strided_slice %103 {offsets = [0, 64], sizes = [8, 32], strides = [1, 1]} : vector<8x128xf32> to vector<8x32xf32>
    %107 = vector.extract_strided_slice %103 {offsets = [0, 96], sizes = [8, 32], strides = [1, 1]} : vector<8x128xf32> to vector<8x32xf32>
    %108 = arith.mulf %105, %72 : vector<8x32xf32>
    %109 = arith.mulf %104, %106 : vector<8x32xf32>
    %110 = arith.addf %108, %109 : vector<8x32xf32>
    %111 = math.tanh %110 : vector<8x32xf32>
    %112 = arith.mulf %107, %111 : vector<8x32xf32>
    %113 = tpu.concatenate %112, %93 in 1 : vector<8x32xf32>, vector<8x32xf32> -> vector<8x64xf32>
    %cst_22 = arith.constant dense<0.000000e+00> : vector<8x128xf32>
    %114 = tpu.matmul %113, %7, %cst_22 {dimension_numbers = #tpu.dot_dimension_numbers<[1], [0], [0], [1], [0, 0, 1, 1], [], []>} : vector<8x64xf32>, vector<64x128xf32>, vector<8x128xf32> -> vector<8x128xf32>
    %115 = arith.addf %114, %10 : vector<8x128xf32>
    %116 = math.tanh %115 : vector<8x128xf32>
    %117 = arith.negf %115 : vector<8x128xf32>
    %118 = math.exp %117 : vector<8x128xf32>
    %cst_23 = arith.constant 1.000000e+00 : f32
    %119 = vector.broadcast %cst_23 : f32 to vector<8x128xf32>
    %120 = arith.addf %119, %118 : vector<8x128xf32>
    %121 = arith.divf %119, %120 : vector<8x128xf32>
    %122 = arith.select %16, %116, %121 : vector<8x128xi1>, vector<8x128xf32>
    %123 = vector.extract_strided_slice %122 {offsets = [0, 0], sizes = [8, 32], strides = [1, 1]} : vector<8x128xf32> to vector<8x32xf32>
    %124 = vector.extract_strided_slice %122 {offsets = [0, 32], sizes = [8, 32], strides = [1, 1]} : vector<8x128xf32> to vector<8x32xf32>
    %125 = vector.extract_strided_slice %122 {offsets = [0, 64], sizes = [8, 32], strides = [1, 1]} : vector<8x128xf32> to vector<8x32xf32>
    %126 = vector.extract_strided_slice %122 {offsets = [0, 96], sizes = [8, 32], strides = [1, 1]} : vector<8x128xf32> to vector<8x32xf32>
    %127 = arith.mulf %124, %91 : vector<8x32xf32>
    %128 = arith.mulf %123, %125 : vector<8x32xf32>
    %129 = arith.addf %127, %128 : vector<8x32xf32>
    %130 = math.tanh %129 : vector<8x32xf32>
    %131 = arith.mulf %126, %130 : vector<8x32xf32>
    %132 = vector.extract_strided_slice %5 {offsets = [24, 0], sizes = [8, 128], strides = [1, 1]} : vector<64x128xf32> to vector<8x128xf32>
    %cst_24 = arith.constant dense<0.000000e+00> : vector<8x128xf32>
    %133 = tpu.matmul %112, %6, %cst_24 {dimension_numbers = #tpu.dot_dimension_numbers<[1], [0], [0], [1], [0, 0, 1, 1], [], []>} : vector<8x32xf32>, vector<32x128xf32>, vector<8x128xf32> -> vector<8x128xf32>
    %134 = arith.addf %132, %133 : vector<8x128xf32>
    %135 = math.tanh %134 : vector<8x128xf32>
    %136 = arith.negf %134 : vector<8x128xf32>
    %137 = math.exp %136 : vector<8x128xf32>
    %cst_25 = arith.constant 1.000000e+00 : f32
    %138 = vector.broadcast %cst_25 : f32 to vector<8x128xf32>
    %139 = arith.addf %138, %137 : vector<8x128xf32>
    %140 = arith.divf %138, %139 : vector<8x128xf32>
    %141 = arith.select %16, %135, %140 : vector<8x128xi1>, vector<8x128xf32>
    %142 = vector.extract_strided_slice %141 {offsets = [0, 0], sizes = [8, 32], strides = [1, 1]} : vector<8x128xf32> to vector<8x32xf32>
    %143 = vector.extract_strided_slice %141 {offsets = [0, 32], sizes = [8, 32], strides = [1, 1]} : vector<8x128xf32> to vector<8x32xf32>
    %144 = vector.extract_strided_slice %141 {offsets = [0, 64], sizes = [8, 32], strides = [1, 1]} : vector<8x128xf32> to vector<8x32xf32>
    %145 = vector.extract_strided_slice %141 {offsets = [0, 96], sizes = [8, 32], strides = [1, 1]} : vector<8x128xf32> to vector<8x32xf32>
    %146 = arith.mulf %143, %110 : vector<8x32xf32>
    %147 = arith.mulf %142, %144 : vector<8x32xf32>
    %148 = arith.addf %146, %147 : vector<8x32xf32>
    %149 = math.tanh %148 : vector<8x32xf32>
    %150 = arith.mulf %145, %149 : vector<8x32xf32>
    %151 = tpu.concatenate %150, %131 in 1 : vector<8x32xf32>, vector<8x32xf32> -> vector<8x64xf32>
    %cst_26 = arith.constant dense<0.000000e+00> : vector<8x128xf32>
    %152 = tpu.matmul %151, %7, %cst_26 {dimension_numbers = #tpu.dot_dimension_numbers<[1], [0], [0], [1], [0, 0, 1, 1], [], []>} : vector<8x64xf32>, vector<64x128xf32>, vector<8x128xf32> -> vector<8x128xf32>
    %153 = arith.addf %152, %10 : vector<8x128xf32>
    %154 = math.tanh %153 : vector<8x128xf32>
    %155 = arith.negf %153 : vector<8x128xf32>
    %156 = math.exp %155 : vector<8x128xf32>
    %cst_27 = arith.constant 1.000000e+00 : f32
    %157 = vector.broadcast %cst_27 : f32 to vector<8x128xf32>
    %158 = arith.addf %157, %156 : vector<8x128xf32>
    %159 = arith.divf %157, %158 : vector<8x128xf32>
    %160 = arith.select %16, %154, %159 : vector<8x128xi1>, vector<8x128xf32>
    %161 = vector.extract_strided_slice %160 {offsets = [0, 0], sizes = [8, 32], strides = [1, 1]} : vector<8x128xf32> to vector<8x32xf32>
    %162 = vector.extract_strided_slice %160 {offsets = [0, 32], sizes = [8, 32], strides = [1, 1]} : vector<8x128xf32> to vector<8x32xf32>
    %163 = vector.extract_strided_slice %160 {offsets = [0, 64], sizes = [8, 32], strides = [1, 1]} : vector<8x128xf32> to vector<8x32xf32>
    %164 = vector.extract_strided_slice %160 {offsets = [0, 96], sizes = [8, 32], strides = [1, 1]} : vector<8x128xf32> to vector<8x32xf32>
    %165 = arith.mulf %162, %129 : vector<8x32xf32>
    %166 = arith.mulf %161, %163 : vector<8x32xf32>
    %167 = arith.addf %165, %166 : vector<8x32xf32>
    %168 = math.tanh %167 : vector<8x32xf32>
    %169 = arith.mulf %164, %168 : vector<8x32xf32>
    %170 = vector.extract_strided_slice %5 {offsets = [32, 0], sizes = [8, 128], strides = [1, 1]} : vector<64x128xf32> to vector<8x128xf32>
    %cst_28 = arith.constant dense<0.000000e+00> : vector<8x128xf32>
    %171 = tpu.matmul %150, %6, %cst_28 {dimension_numbers = #tpu.dot_dimension_numbers<[1], [0], [0], [1], [0, 0, 1, 1], [], []>} : vector<8x32xf32>, vector<32x128xf32>, vector<8x128xf32> -> vector<8x128xf32>
    %172 = arith.addf %170, %171 : vector<8x128xf32>
    %173 = math.tanh %172 : vector<8x128xf32>
    %174 = arith.negf %172 : vector<8x128xf32>
    %175 = math.exp %174 : vector<8x128xf32>
    %cst_29 = arith.constant 1.000000e+00 : f32
    %176 = vector.broadcast %cst_29 : f32 to vector<8x128xf32>
    %177 = arith.addf %176, %175 : vector<8x128xf32>
    %178 = arith.divf %176, %177 : vector<8x128xf32>
    %179 = arith.select %16, %173, %178 : vector<8x128xi1>, vector<8x128xf32>
    %180 = vector.extract_strided_slice %179 {offsets = [0, 0], sizes = [8, 32], strides = [1, 1]} : vector<8x128xf32> to vector<8x32xf32>
    %181 = vector.extract_strided_slice %179 {offsets = [0, 32], sizes = [8, 32], strides = [1, 1]} : vector<8x128xf32> to vector<8x32xf32>
    %182 = vector.extract_strided_slice %179 {offsets = [0, 64], sizes = [8, 32], strides = [1, 1]} : vector<8x128xf32> to vector<8x32xf32>
    %183 = vector.extract_strided_slice %179 {offsets = [0, 96], sizes = [8, 32], strides = [1, 1]} : vector<8x128xf32> to vector<8x32xf32>
    %184 = arith.mulf %181, %148 : vector<8x32xf32>
    %185 = arith.mulf %180, %182 : vector<8x32xf32>
    %186 = arith.addf %184, %185 : vector<8x32xf32>
    %187 = math.tanh %186 : vector<8x32xf32>
    %188 = arith.mulf %183, %187 : vector<8x32xf32>
    %189 = tpu.concatenate %188, %169 in 1 : vector<8x32xf32>, vector<8x32xf32> -> vector<8x64xf32>
    %cst_30 = arith.constant dense<0.000000e+00> : vector<8x128xf32>
    %190 = tpu.matmul %189, %7, %cst_30 {dimension_numbers = #tpu.dot_dimension_numbers<[1], [0], [0], [1], [0, 0, 1, 1], [], []>} : vector<8x64xf32>, vector<64x128xf32>, vector<8x128xf32> -> vector<8x128xf32>
    %191 = arith.addf %190, %10 : vector<8x128xf32>
    %192 = math.tanh %191 : vector<8x128xf32>
    %193 = arith.negf %191 : vector<8x128xf32>
    %194 = math.exp %193 : vector<8x128xf32>
    %cst_31 = arith.constant 1.000000e+00 : f32
    %195 = vector.broadcast %cst_31 : f32 to vector<8x128xf32>
    %196 = arith.addf %195, %194 : vector<8x128xf32>
    %197 = arith.divf %195, %196 : vector<8x128xf32>
    %198 = arith.select %16, %192, %197 : vector<8x128xi1>, vector<8x128xf32>
    %199 = vector.extract_strided_slice %198 {offsets = [0, 0], sizes = [8, 32], strides = [1, 1]} : vector<8x128xf32> to vector<8x32xf32>
    %200 = vector.extract_strided_slice %198 {offsets = [0, 32], sizes = [8, 32], strides = [1, 1]} : vector<8x128xf32> to vector<8x32xf32>
    %201 = vector.extract_strided_slice %198 {offsets = [0, 64], sizes = [8, 32], strides = [1, 1]} : vector<8x128xf32> to vector<8x32xf32>
    %202 = vector.extract_strided_slice %198 {offsets = [0, 96], sizes = [8, 32], strides = [1, 1]} : vector<8x128xf32> to vector<8x32xf32>
    %203 = arith.mulf %200, %167 : vector<8x32xf32>
    %204 = arith.mulf %199, %201 : vector<8x32xf32>
    %205 = arith.addf %203, %204 : vector<8x32xf32>
    %206 = math.tanh %205 : vector<8x32xf32>
    %207 = arith.mulf %202, %206 : vector<8x32xf32>
    %208 = vector.extract_strided_slice %5 {offsets = [40, 0], sizes = [8, 128], strides = [1, 1]} : vector<64x128xf32> to vector<8x128xf32>
    %cst_32 = arith.constant dense<0.000000e+00> : vector<8x128xf32>
    %209 = tpu.matmul %188, %6, %cst_32 {dimension_numbers = #tpu.dot_dimension_numbers<[1], [0], [0], [1], [0, 0, 1, 1], [], []>} : vector<8x32xf32>, vector<32x128xf32>, vector<8x128xf32> -> vector<8x128xf32>
    %210 = arith.addf %208, %209 : vector<8x128xf32>
    %211 = math.tanh %210 : vector<8x128xf32>
    %212 = arith.negf %210 : vector<8x128xf32>
    %213 = math.exp %212 : vector<8x128xf32>
    %cst_33 = arith.constant 1.000000e+00 : f32
    %214 = vector.broadcast %cst_33 : f32 to vector<8x128xf32>
    %215 = arith.addf %214, %213 : vector<8x128xf32>
    %216 = arith.divf %214, %215 : vector<8x128xf32>
    %217 = arith.select %16, %211, %216 : vector<8x128xi1>, vector<8x128xf32>
    %218 = vector.extract_strided_slice %217 {offsets = [0, 0], sizes = [8, 32], strides = [1, 1]} : vector<8x128xf32> to vector<8x32xf32>
    %219 = vector.extract_strided_slice %217 {offsets = [0, 32], sizes = [8, 32], strides = [1, 1]} : vector<8x128xf32> to vector<8x32xf32>
    %220 = vector.extract_strided_slice %217 {offsets = [0, 64], sizes = [8, 32], strides = [1, 1]} : vector<8x128xf32> to vector<8x32xf32>
    %221 = vector.extract_strided_slice %217 {offsets = [0, 96], sizes = [8, 32], strides = [1, 1]} : vector<8x128xf32> to vector<8x32xf32>
    %222 = arith.mulf %219, %186 : vector<8x32xf32>
    %223 = arith.mulf %218, %220 : vector<8x32xf32>
    %224 = arith.addf %222, %223 : vector<8x32xf32>
    %225 = math.tanh %224 : vector<8x32xf32>
    %226 = arith.mulf %221, %225 : vector<8x32xf32>
    %227 = tpu.concatenate %226, %207 in 1 : vector<8x32xf32>, vector<8x32xf32> -> vector<8x64xf32>
    %cst_34 = arith.constant dense<0.000000e+00> : vector<8x128xf32>
    %228 = tpu.matmul %227, %7, %cst_34 {dimension_numbers = #tpu.dot_dimension_numbers<[1], [0], [0], [1], [0, 0, 1, 1], [], []>} : vector<8x64xf32>, vector<64x128xf32>, vector<8x128xf32> -> vector<8x128xf32>
    %229 = arith.addf %228, %10 : vector<8x128xf32>
    %230 = math.tanh %229 : vector<8x128xf32>
    %231 = arith.negf %229 : vector<8x128xf32>
    %232 = math.exp %231 : vector<8x128xf32>
    %cst_35 = arith.constant 1.000000e+00 : f32
    %233 = vector.broadcast %cst_35 : f32 to vector<8x128xf32>
    %234 = arith.addf %233, %232 : vector<8x128xf32>
    %235 = arith.divf %233, %234 : vector<8x128xf32>
    %236 = arith.select %16, %230, %235 : vector<8x128xi1>, vector<8x128xf32>
    %237 = vector.extract_strided_slice %236 {offsets = [0, 0], sizes = [8, 32], strides = [1, 1]} : vector<8x128xf32> to vector<8x32xf32>
    %238 = vector.extract_strided_slice %236 {offsets = [0, 32], sizes = [8, 32], strides = [1, 1]} : vector<8x128xf32> to vector<8x32xf32>
    %239 = vector.extract_strided_slice %236 {offsets = [0, 64], sizes = [8, 32], strides = [1, 1]} : vector<8x128xf32> to vector<8x32xf32>
    %240 = vector.extract_strided_slice %236 {offsets = [0, 96], sizes = [8, 32], strides = [1, 1]} : vector<8x128xf32> to vector<8x32xf32>
    %241 = arith.mulf %238, %205 : vector<8x32xf32>
    %242 = arith.mulf %237, %239 : vector<8x32xf32>
    %243 = arith.addf %241, %242 : vector<8x32xf32>
    %244 = math.tanh %243 : vector<8x32xf32>
    %245 = arith.mulf %240, %244 : vector<8x32xf32>
    %246 = vector.extract_strided_slice %5 {offsets = [48, 0], sizes = [8, 128], strides = [1, 1]} : vector<64x128xf32> to vector<8x128xf32>
    %cst_36 = arith.constant dense<0.000000e+00> : vector<8x128xf32>
    %247 = tpu.matmul %226, %6, %cst_36 {dimension_numbers = #tpu.dot_dimension_numbers<[1], [0], [0], [1], [0, 0, 1, 1], [], []>} : vector<8x32xf32>, vector<32x128xf32>, vector<8x128xf32> -> vector<8x128xf32>
    %248 = arith.addf %246, %247 : vector<8x128xf32>
    %249 = math.tanh %248 : vector<8x128xf32>
    %250 = arith.negf %248 : vector<8x128xf32>
    %251 = math.exp %250 : vector<8x128xf32>
    %cst_37 = arith.constant 1.000000e+00 : f32
    %252 = vector.broadcast %cst_37 : f32 to vector<8x128xf32>
    %253 = arith.addf %252, %251 : vector<8x128xf32>
    %254 = arith.divf %252, %253 : vector<8x128xf32>
    %255 = arith.select %16, %249, %254 : vector<8x128xi1>, vector<8x128xf32>
    %256 = vector.extract_strided_slice %255 {offsets = [0, 0], sizes = [8, 32], strides = [1, 1]} : vector<8x128xf32> to vector<8x32xf32>
    %257 = vector.extract_strided_slice %255 {offsets = [0, 32], sizes = [8, 32], strides = [1, 1]} : vector<8x128xf32> to vector<8x32xf32>
    %258 = vector.extract_strided_slice %255 {offsets = [0, 64], sizes = [8, 32], strides = [1, 1]} : vector<8x128xf32> to vector<8x32xf32>
    %259 = vector.extract_strided_slice %255 {offsets = [0, 96], sizes = [8, 32], strides = [1, 1]} : vector<8x128xf32> to vector<8x32xf32>
    %260 = arith.mulf %257, %224 : vector<8x32xf32>
    %261 = arith.mulf %256, %258 : vector<8x32xf32>
    %262 = arith.addf %260, %261 : vector<8x32xf32>
    %263 = math.tanh %262 : vector<8x32xf32>
    %264 = arith.mulf %259, %263 : vector<8x32xf32>
    %265 = tpu.concatenate %264, %245 in 1 : vector<8x32xf32>, vector<8x32xf32> -> vector<8x64xf32>
    %cst_38 = arith.constant dense<0.000000e+00> : vector<8x128xf32>
    %266 = tpu.matmul %265, %7, %cst_38 {dimension_numbers = #tpu.dot_dimension_numbers<[1], [0], [0], [1], [0, 0, 1, 1], [], []>} : vector<8x64xf32>, vector<64x128xf32>, vector<8x128xf32> -> vector<8x128xf32>
    %267 = arith.addf %266, %10 : vector<8x128xf32>
    %268 = math.tanh %267 : vector<8x128xf32>
    %269 = arith.negf %267 : vector<8x128xf32>
    %270 = math.exp %269 : vector<8x128xf32>
    %cst_39 = arith.constant 1.000000e+00 : f32
    %271 = vector.broadcast %cst_39 : f32 to vector<8x128xf32>
    %272 = arith.addf %271, %270 : vector<8x128xf32>
    %273 = arith.divf %271, %272 : vector<8x128xf32>
    %274 = arith.select %16, %268, %273 : vector<8x128xi1>, vector<8x128xf32>
    %275 = vector.extract_strided_slice %274 {offsets = [0, 0], sizes = [8, 32], strides = [1, 1]} : vector<8x128xf32> to vector<8x32xf32>
    %276 = vector.extract_strided_slice %274 {offsets = [0, 32], sizes = [8, 32], strides = [1, 1]} : vector<8x128xf32> to vector<8x32xf32>
    %277 = vector.extract_strided_slice %274 {offsets = [0, 64], sizes = [8, 32], strides = [1, 1]} : vector<8x128xf32> to vector<8x32xf32>
    %278 = vector.extract_strided_slice %274 {offsets = [0, 96], sizes = [8, 32], strides = [1, 1]} : vector<8x128xf32> to vector<8x32xf32>
    %279 = arith.mulf %276, %243 : vector<8x32xf32>
    %280 = arith.mulf %275, %277 : vector<8x32xf32>
    %281 = arith.addf %279, %280 : vector<8x32xf32>
    %282 = math.tanh %281 : vector<8x32xf32>
    %283 = arith.mulf %278, %282 : vector<8x32xf32>
    %284 = vector.extract_strided_slice %5 {offsets = [56, 0], sizes = [8, 128], strides = [1, 1]} : vector<64x128xf32> to vector<8x128xf32>
    %cst_40 = arith.constant dense<0.000000e+00> : vector<8x128xf32>
    %285 = tpu.matmul %264, %6, %cst_40 {dimension_numbers = #tpu.dot_dimension_numbers<[1], [0], [0], [1], [0, 0, 1, 1], [], []>} : vector<8x32xf32>, vector<32x128xf32>, vector<8x128xf32> -> vector<8x128xf32>
    %286 = arith.addf %284, %285 : vector<8x128xf32>
    %287 = math.tanh %286 : vector<8x128xf32>
    %288 = arith.negf %286 : vector<8x128xf32>
    %289 = math.exp %288 : vector<8x128xf32>
    %cst_41 = arith.constant 1.000000e+00 : f32
    %290 = vector.broadcast %cst_41 : f32 to vector<8x128xf32>
    %291 = arith.addf %290, %289 : vector<8x128xf32>
    %292 = arith.divf %290, %291 : vector<8x128xf32>
    %293 = arith.select %16, %287, %292 : vector<8x128xi1>, vector<8x128xf32>
    %294 = vector.extract_strided_slice %293 {offsets = [0, 0], sizes = [8, 32], strides = [1, 1]} : vector<8x128xf32> to vector<8x32xf32>
    %295 = vector.extract_strided_slice %293 {offsets = [0, 32], sizes = [8, 32], strides = [1, 1]} : vector<8x128xf32> to vector<8x32xf32>
    %296 = vector.extract_strided_slice %293 {offsets = [0, 64], sizes = [8, 32], strides = [1, 1]} : vector<8x128xf32> to vector<8x32xf32>
    %297 = vector.extract_strided_slice %293 {offsets = [0, 96], sizes = [8, 32], strides = [1, 1]} : vector<8x128xf32> to vector<8x32xf32>
    %298 = arith.mulf %295, %262 : vector<8x32xf32>
    %299 = arith.mulf %294, %296 : vector<8x32xf32>
    %300 = arith.addf %298, %299 : vector<8x32xf32>
    %301 = math.tanh %300 : vector<8x32xf32>
    %302 = arith.mulf %297, %301 : vector<8x32xf32>
    %303 = tpu.concatenate %302, %283 in 1 : vector<8x32xf32>, vector<8x32xf32> -> vector<8x64xf32>
    %cst_42 = arith.constant dense<0.000000e+00> : vector<8x128xf32>
    %304 = tpu.matmul %303, %7, %cst_42 {dimension_numbers = #tpu.dot_dimension_numbers<[1], [0], [0], [1], [0, 0, 1, 1], [], []>} : vector<8x64xf32>, vector<64x128xf32>, vector<8x128xf32> -> vector<8x128xf32>
    %305 = arith.addf %304, %10 : vector<8x128xf32>
    %306 = math.tanh %305 : vector<8x128xf32>
    %307 = arith.negf %305 : vector<8x128xf32>
    %308 = math.exp %307 : vector<8x128xf32>
    %cst_43 = arith.constant 1.000000e+00 : f32
    %309 = vector.broadcast %cst_43 : f32 to vector<8x128xf32>
    %310 = arith.addf %309, %308 : vector<8x128xf32>
    %311 = arith.divf %309, %310 : vector<8x128xf32>
    %312 = arith.select %16, %306, %311 : vector<8x128xi1>, vector<8x128xf32>
    %313 = vector.extract_strided_slice %312 {offsets = [0, 0], sizes = [8, 32], strides = [1, 1]} : vector<8x128xf32> to vector<8x32xf32>
    %314 = vector.extract_strided_slice %312 {offsets = [0, 32], sizes = [8, 32], strides = [1, 1]} : vector<8x128xf32> to vector<8x32xf32>
    %315 = vector.extract_strided_slice %312 {offsets = [0, 64], sizes = [8, 32], strides = [1, 1]} : vector<8x128xf32> to vector<8x32xf32>
    %316 = vector.extract_strided_slice %312 {offsets = [0, 96], sizes = [8, 32], strides = [1, 1]} : vector<8x128xf32> to vector<8x32xf32>
    %317 = arith.mulf %314, %281 : vector<8x32xf32>
    %318 = arith.mulf %313, %315 : vector<8x32xf32>
    %319 = arith.addf %317, %318 : vector<8x32xf32>
    %320 = math.tanh %319 : vector<8x32xf32>
    %321 = arith.mulf %316, %320 : vector<8x32xf32>
    %c0_44 = arith.constant 0 : index
    %c0_45 = arith.constant 0 : index
    %322 = vector.load %arg6[%c0_44, %c0_45] : memref<1x32xf32, #tpu.memory_space<vmem>>, vector<1x32xf32>
    %323 = vector.broadcast %322 : vector<1x32xf32> to vector<8x32xf32>
    %324 = arith.mulf %321, %323 : vector<8x32xf32>
    %c0_46 = arith.constant 0 : index
    %c0_47 = arith.constant 0 : index
    %325 = vector.load %arg7[%c0_46, %c0_47] : memref<1x32xf32, #tpu.memory_space<vmem>>, vector<1x32xf32>
    %326 = vector.broadcast %325 : vector<1x32xf32> to vector<8x32xf32>
    %327 = arith.addf %324, %326 : vector<8x32xf32>
    %c0_48 = arith.constant 0 : index
    %c0_49 = arith.constant 0 : index
    %328 = vector.load %arg8[%c0_48, %c0_49] : memref<32x16xf32, #tpu.memory_space<vmem>>, vector<32x16xf32>
    %cst_50 = arith.constant dense<0.000000e+00> : vector<8x16xf32>
    %329 = tpu.matmul %327, %328, %cst_50 {dimension_numbers = #tpu.dot_dimension_numbers<[1], [0], [0], [1], [0, 0, 1, 1], [], []>} : vector<8x32xf32>, vector<32x16xf32>, vector<8x16xf32> -> vector<8x16xf32>
    %c0_51 = arith.constant 0 : index
    %c0_52 = arith.constant 0 : index
    %330 = vector.load %arg9[%c0_51, %c0_52] : memref<1x16xf32, #tpu.memory_space<vmem>>, vector<1x16xf32>
    %331 = vector.broadcast %330 : vector<1x16xf32> to vector<8x16xf32>
    %332 = arith.addf %329, %331 : vector<8x16xf32>
    %cst_53 = arith.constant 0.000000e+00 : f32
    %333 = vector.broadcast %cst_53 : f32 to vector<8x16xf32>
    %334 = arith.maximumf %332, %333 : vector<8x16xf32>
    %c0_54 = arith.constant 0 : index
    %c0_55 = arith.constant 0 : index
    %335 = vector.load %arg10[%c0_54, %c0_55] : memref<16x128xf32, #tpu.memory_space<vmem>>, vector<16x128xf32>
    %cst_56 = arith.constant dense<0.000000e+00> : vector<8x128xf32>
    %336 = tpu.matmul %334, %335, %cst_56 {dimension_numbers = #tpu.dot_dimension_numbers<[1], [0], [0], [1], [0, 0, 1, 1], [], []>} : vector<8x16xf32>, vector<16x128xf32>, vector<8x128xf32> -> vector<8x128xf32>
    %c0_57 = arith.constant 0 : index
    %c0_58 = arith.constant 0 : index
    %337 = vector.load %arg11[%c0_57, %c0_58] : memref<1x128xf32, #tpu.memory_space<vmem>>, vector<1x128xf32>
    %338 = vector.broadcast %337 : vector<1x128xf32> to vector<8x128xf32>
    %339 = arith.addf %336, %338 : vector<8x128xf32>
    %340 = arith.negf %339 : vector<8x128xf32>
    %341 = math.exp %340 : vector<8x128xf32>
    %cst_59 = arith.constant 1.000000e+00 : f32
    %342 = vector.broadcast %cst_59 : f32 to vector<8x128xf32>
    %343 = arith.addf %342, %341 : vector<8x128xf32>
    %344 = arith.divf %342, %343 : vector<8x128xf32>
    %c0_60 = arith.constant 0 : index
    %c0_61 = arith.constant 0 : index
    %345 = vector.load %arg12[%c0_60, %c0_61] : memref<8x128xf32, #tpu.memory_space<vmem>>, vector<8x128xf32>
    tpu.vector_store %arg12[%c0_60, %c0_61], %344 {strides = array<i32>} : memref<8x128xf32, #tpu.memory_space<vmem>>, vector<8x128xf32>,
    return
  }
}

</mosaic_0001>

<bundles_post_ra>
// kernel: tpu_custom_call.1
= control target key start
LH: loop header
LB: loop body
LE: loop exit
PB: predicated region body
PF: predicated region fallthrough
CT: control target
= control target key end

     0   :  { %vm83_vm0 = vcmask 1043456   ;;  %vm58_vm1 = vcmask 31744   ;;  %v2690_v2 = vmov 0.0   ;;  %s3378_s0 = inlined_call_operand.vmem [shape: f32[64,4], index: 0, kind: input, shape index: {}]   ;;  %s3379_s1 = inlined_call_operand.vmem [shape: f32[4,128], index: 1, kind: input, shape index: {}]   ;;  %s3380_s2 = inlined_call_operand.vmem [shape: f32[32,128], index: 2, kind: input, shape index: {}]   ;;  %s3381_s3 = inlined_call_operand.vmem [shape: f32[1,128], index: 3, kind: input, shape index: {}]   ;;  %s3382_s4 = inlined_call_operand.vmem [shape: f32[64,128], index: 4, kind: input, shape index: {}]   ;;  %s3383_s5 = inlined_call_operand.vmem [shape: f32[1,128], index: 5, kind: input, shape index: {}]   ;;  %s3384_s6 = inlined_call_operand.vmem [shape: f32[1,32], index: 6, kind: input, shape index: {}]   ;;  %s3385_s7 = inlined_call_operand.vmem [shape: f32[1,32], index: 7, kind: input, shape index: {}]   ;;  %s3386_s8 = inlined_call_operand.vmem [shape: f32[32,16], index: 8, kind: input, shape index: {}]   ;;  %s3387_s9 = inlined_call_operand.vmem [shape: f32[1,16], index: 9, kind: input, shape index: {}]   ;;  %s3388_s10 = inlined_call_operand.vmem [shape: f32[16,128], index: 10, kind: input, shape index: {}]   ;;  %s3389_s11 = inlined_call_operand.vmem [shape: f32[1,128], index: 11, kind: input, shape index: {}]   ;;  %s3390_s12 = inlined_call_operand.hbm [shape: f32[8,128], index: 12, kind: output, shape index: {}]  }
   0x1   :  { %v50_v0 = vld [vmem:[%s3379_s1] sm:$0xf]  ;;  %2258 = vmatprep.subr.mxu1 %v2690_v2  ;;  %v2771_v3 = vld [vmem:[%s3380_s2 + $0x18] sm:$0xff]  ;;  %v43_v4 = vld [vmem:[%s3378_s0 + $0x8] sm:$0xff] }
   0x2   :  { %v42_v1 = vld [vmem:[%s3378_s0] sm:$0xff]  ;;  %2244 = vmatprep.subr.msk.mxu0 %vm83_vm0, %v50_v0  ;;  %v2780_v5 = vld [vmem:[%s3380_s2 + $0x10] sm:$0xff] }
   0x3   :  { %2245 = vmatpush3.msk.msra.mxu0 %vm83_vm0, %v50_v0  ;;  %2246 = vmatprep.mubr.msk.f32.mxu0 %vm58_vm1, %v42_v1 }
   0x4   :  { %17 = vsyncpa [#allocation3], 0  ;;  %2259 = vmatpush3.msra.mxu1 %v2771_v3  ;;  %2247 = vmatmul.mubr.msk.f32.vlgmr.msra.gmra.mxu0 %vm58_vm1, %v43_v4  ;;  %v2788_v6 = vld [vmem:[%s3380_s2 + $0x8] sm:$0xff]  ;;  %vm2691_vm2 = vmmov 0   ;;  %v2798_v7 = vld [vmem:[%s3380_s2] sm:$0xff]  ;;  %v211_v18 = vlaneseq  ;;  %s2692_s18 = smov 64  }
   0x5   :  { %2260 = vmatprep.subr.mxu1 %v2690_v2  ;;  %2266 = vmatprep.mubr.msk.f32.mxu1 %vm2691_vm2, %v2690_v2  ;;  %v2820_v9 = vld [vmem:[%s3381_s3] ss:$0 sm:$0xff]  ;;  %s2693_s19 = smov 32   ;;  %v2837_v29 = vld [vmem:[%s3382_s4 + $0x38] sm:$0xff]  ;;  %v44_v30 = vld [vmem:[%s3378_s0 + $0x10] sm:$0xff]  ;;  %vm216_vm6 = vcmask 261120  }
   0x6   :  { %2261 = vmatpush3.msra.mxu1 %v2780_v5  ;;  %2269 = vmatprep.subr.mxu0 %v2690_v2  ;;  %v212_v19 = vand.u32 127, %v211_v18  ;;  %v45_v31 = vld [vmem:[%s3378_s0 + $0x18] sm:$0xff]  ;;  %v2850_v32 = vld [vmem:[%s3382_s4 + $0x30] sm:$0xff]  ;;  %v46_v33 = vld [vmem:[%s3378_s0 + $0x20] sm:$0xff]  ;;  %vm321_vm7 = vcmask 523264   ;;  %s2694_s23 = smov 96  }
   0x7   :  { %2262 = vmatprep.subr.mxu1 %v2690_v2  ;;  %2270 = vmatpush3.msra.mxu0 %v2837_v29  ;;  %v2860_v34 = vld [vmem:[%s3382_s4 + $0x28] sm:$0xff]  ;;  %v2871_v36 = vld [vmem:[%s3382_s4 + $0x20] sm:$0xff]  ;;  %v48_v37 = vld [vmem:[%s3378_s0 + $0x30] sm:$0xff]  ;;  %vm1971_vm8 = vcmask 130048  }
   0x8   :  { %2263 = vmatpush3.msra.mxu1 %v2788_v6  ;;  %vm213_vm3 = vcmp.ge.s32.totalorder %v212_v19, 64  ;;  %vm214_vm4 = vcmp.lt.s32.totalorder %v212_v19, 96  ;;  %2249 = vmatprep.mubr.msk.f32.mxu0 %vm58_vm1, %v44_v30  ;;  %v47_v35 = vld [vmem:[%s3378_s0 + $0x28] sm:$0xff]  ;;  %v2882_v38 = vld [vmem:[%s3382_s4 + $0x18] sm:$0xff]  ;;  %v2893_v40 = vld [vmem:[%s3382_s4 + $0x10] sm:$0xff] }
   0x9   :  { %2264 = vmatprep.subr.mxu1 %v2690_v2  ;;  %vm2823_vm5 = vmand %vm213_vm3, %vm214_vm4  ;;  %2271 = vmatprep.subr.mxu0 %v2690_v2  ;;  %v49_v39 = vld [vmem:[%s3378_s0 + $0x38] sm:$0xff]  ;;  %v2901_v42 = vld [vmem:[%s3382_s4 + $0x8] sm:$0xff] }
   0xa   :  { %2265 = vmatpush3.msra.mxu1 %v2798_v7  ;;  %2250 = vmatmul.mubr.msk.f32.gmra.mxu0 %vm58_vm1, %v45_v31  ;;  %v2909_v43 = vld [vmem:[%s3382_s4] sm:$0xff]  ;;  %v1878_v20 = vld [vmem:[%s3386_s8 + $0x18] sm:$0xff] }
   0xb   :  { %2267 = vmatmul.mubr.f32.vlgmr.msra.gmra.mxu1 %v2690_v2  ;;  %2288 = vmatprep.subr.mxu1 %v2690_v2  ;;  %v2966_v55 = vld [vmem:[%s3383_s5] ss:$0 sm:$0xff] }
   0xc   :  { %2289 = vmatpush3.msra.mxu1 %v2771_v3  ;;  %2296 = vmatprep.mubr.msk.f32.mxu1 %vm2691_vm2, %v2690_v2 }
   0xd   :  { %2290 = vmatprep.subr.mxu1 %v2690_v2  ;;  %2272 = vmatpush3.msra.mxu0 %v2850_v32 }
   0xe   :  { %2291 = vmatpush3.msra.mxu1 %v2780_v5  ;;  %2252 = vmatprep.mubr.msk.f32.mxu0 %vm58_vm1, %v46_v33 }
   0xf   :  { %2292 = vmatprep.subr.mxu1 %v2690_v2  ;;  %2273 = vmatprep.subr.mxu0 %v2690_v2 }
  0x10   :  { %2293 = vmatpush3.msra.mxu1 %v2788_v6  ;;  %2274 = vmatpush3.msra.mxu0 %v2860_v34 }
  0x11   :  { %2294 = vmatprep.subr.mxu1 %v2690_v2  ;;  %2275 = vmatprep.subr.mxu0 %v2690_v2 }
  0x12   :  { %2295 = vmatpush3.msra.mxu1 %v2798_v7  ;;  %2253 = vmatmul.mubr.msk.f32.gmra.mxu0 %vm58_vm1, %v47_v35 }
  0x13   :  { %2299 = vmatprep.subr.mxu1 %v2690_v2  ;;  %2276 = vmatpush3.msra.mxu0 %v2871_v36 }
  0x14   :  { %2255 = vmatprep.mubr.msk.f32.mxu0 %vm58_vm1, %v48_v37  ;;  %2277 = vmatprep.subr.mxu0 %v2690_v2 }
  0x15   :  { %2278 = vmatpush3.msra.mxu0 %v2882_v38 }
  0x16   :  { %2279 = vmatprep.subr.mxu0 %v2690_v2  ;;  %2256 = vmatmul.mubr.msk.f32.gmra.mxu0 %vm58_vm1, %v49_v39 }
  0x17   :  { %2280 = vmatpush3.msra.mxu0 %v2893_v40  ;;  %2285 = vmatprep.mubr.msk.f32.mxu0 %vm2691_vm2, %v2690_v2 }
  0x18   :  { %2281 = vmatprep.subr.mxu0 %v2690_v2 }
  0x19   :  { %2282 = vmatpush3.msra.mxu0 %v2901_v42 }
  0x1a   :  { %2283 = vmatprep.subr.mxu0 %v2690_v2 }
  0x1b   :  { %2284 = vmatpush3.msra.mxu0 %v2909_v43 }
  0x1c   :  { %2318 = vmatprep.subr.mxu0 %v2690_v2 }
  0xc4   :  { %v2815_v8 = vpop.f32.mrf.mxu0 }
  0xc5   :  { %v159_v53 = vadd.f32 %v2815_v8, %v2820_v9 }
  0xc6   :  { %v153_v10 = vpop.f32.mrf.mxu0 }
  0xc7   :  { %v154_v11 = vadd.f32 %v2820_v9, %v153_v10 }
  0xca   :  { %v2949_v48 = vpop.f32.mrf.mxu0 }
  0xcb   :  { %v286_v12 = vpop.f32.mrf.mxu1 }
  0xcc   :  { %v290_v13 = vadd.f32 %v286_v12, %v154_v11  ;;  %v2951_v49 = vpop.f32.mrf.mxu0 }
  0xcd   :  { %v2268_v14 = vpop.f32.mrf.mxu1 }
  0xce   :  { %v2077_v15 = vmul.f32 -1.442695, %v290_v13 }
  0xd0   :  { %2522 = vpow2.f32 %v2077_v15 }
  0xd1   :  { %2524 = vtanh.f32 %v290_v13 }
  0xd2   :  { %v2953_v50 = vpop.f32.mrf.mxu0 }
  0xd4   :  { %v2955_v51 = vpop.f32.mrf.mxu0 }
  0xd6   :  { %v2957_v52 = vpop.f32.mrf.mxu0 }
  0xd8   :  { %v2961_v54 = vpop.f32.mrf.mxu0 }
  0xdd   :  { %v2523_v16 = vpop.eup %2522 }
  0xde   :  { %v295_v17 = vadd.f32 1.0, %v2523_v16  ;;  %v2525_v21 = vpop.eup %2524 }
  0xe0   :  { %2526 = vrcp.f32 %v295_v17 }
  0xed   :  { %v2527_v22 = vpop.eup %2526 }
  0xee   :  { %v298_v23 = vsel %vm2823_vm5, %v2525_v21, %v2527_v22 }
  0xef   :  { %301 = vrot.lane.b32.xlu0 %v298_v23, %s2692_s18  ;;  %v299_v26 = vmul.f32 0.0, %v298_v23 }
 0x161   :  { %v302_v24 = vpop.permute.xlu0 %301 }
 0x162   :  { %v304_v25 = vmul.f32 %v302_v24, %v298_v23 }
 0x164   :  { %306 = vrot.lane.b32.xlu0 %v304_v25, %s2693_s19 }
 0x1d6   :  { %v307_v27 = vpop.permute.xlu0 %306 }
 0x1d7   :  { %v2831_v28 = vadd.f32 %v307_v27, %v299_v26 }
 0x1d9   :  { %2528 = vtanh.f32 %v2831_v28 }
 0x1e6   :  { %v2529_v41 = vpop.eup %2528 }
 0x1e7   :  { %312 = vrot.lane.b32.xlu1 %v2529_v41, %s2692_s18 }
 0x259   :  { %v313_v44 = vpop.permute.xlu1 %312 }
 0x25a   :  { %v315_v45 = vmul.f32 %v313_v44, %v298_v23  ;;  %v164_v44 = vadd.f32 %v2820_v9, %v2951_v49 }
 0x25c   :  { %317 = vrot.lane.b32.xlu1 %v315_v45, %s2693_s19 }
 0x2ce   :  { %v318_v46 = vpop.permute.xlu1 %317 }
 0x2cf   :  { %v320_v47 = vsel %vm216_vm6, %v318_v46, 0.0  ;;  %2297 = vmatmul.mubr.msk.f32.vlgmr.msra.gmra.mxu1 %vm216_vm6, %v318_v46 }
 0x2d0   :  { %2286 = vmatmul.mubr.msk.f32.vlgmr.msra.gmra.mxu0 %vm321_vm7, %v320_v47  ;;  %2300 = vmatpush3.msra.mxu1 %v2837_v29 }
 0x2d1   :  { %2301 = vmatprep.subr.mxu1 %v2690_v2  ;;  %2319 = vmatpush3.msra.mxu0 %v2771_v3 }
 0x2d2   :  { %2302 = vmatpush3.msra.mxu1 %v2850_v32  ;;  %2320 = vmatprep.subr.mxu0 %v2690_v2 }
 0x2d3   :  { %2303 = vmatprep.subr.mxu1 %v2690_v2  ;;  %2321 = vmatpush3.msra.mxu0 %v2780_v5 }
 0x2d4   :  { %2304 = vmatpush3.msra.mxu1 %v2860_v34  ;;  %2322 = vmatprep.subr.mxu0 %v2690_v2 }
 0x2d5   :  { %2305 = vmatprep.subr.mxu1 %v2690_v2  ;;  %2323 = vmatpush3.msra.mxu0 %v2788_v6 }
 0x2d6   :  { %2306 = vmatpush3.msra.mxu1 %v2871_v36  ;;  %2324 = vmatprep.subr.mxu0 %v2690_v2 }
 0x2d7   :  { %2307 = vmatprep.subr.mxu1 %v2690_v2  ;;  %2325 = vmatpush3.msra.mxu0 %v2798_v7 }
 0x2d8   :  { %2308 = vmatpush3.msra.mxu1 %v2882_v38  ;;  %2326 = vmatprep.mubr.msk.f32.mxu0 %vm2691_vm2, %v2690_v2 }
 0x2d9   :  { %2309 = vmatprep.subr.mxu1 %v2690_v2  ;;  %2315 = vmatprep.mubr.msk.f32.mxu1 %vm2691_vm2, %v2690_v2 }
 0x2da   :  { %2310 = vmatpush3.msra.mxu1 %v2893_v40  ;;  %2329 = vmatprep.subr.mxu0 %v2690_v2 }
 0x2db   :  { %2311 = vmatprep.subr.mxu1 %v2690_v2 }
 0x2dc   :  { %2312 = vmatpush3.msra.mxu1 %v2901_v42 }
 0x2dd   :  { %2313 = vmatprep.subr.mxu1 %v2690_v2 }
 0x2de   :  { %2314 = vmatpush3.msra.mxu1 %v2909_v43 }
 0x2df   :  { %2348 = vmatprep.subr.mxu1 %v2690_v2 }
 0x38f   :  { %v488_v56 = vpop.f32.mrf.mxu1 }
 0x390   :  { %v492_v57 = vadd.f32 %v488_v56, %v159_v53  ;;  %v391_v58 = vpop.f32.mrf.mxu0 }
 0x391   :  { %v392_v59 = vadd.f32 %v2966_v55, %v391_v58  ;;  %v2298_v60 = vpop.f32.mrf.mxu1 }
 0x392   :  { %v2081_v61 = vmul.f32 -1.442695, %v492_v57  ;;  %v2287_v62 = vpop.f32.mrf.mxu0 }
 0x393   :  { %v2079_v63 = vmul.f32 -1.442695, %v392_v59 }
 0x394   :  { %2530 = vpow2.f32 %v2081_v61 }
 0x395   :  { %2532 = vpow2.f32 %v2079_v63 }
 0x396   :  { %2534 = vtanh.f32 %v492_v57 }
 0x397   :  { %2536 = vtanh.f32 %v392_v59 }
 0x3a1   :  { %v2531_v0 = vpop.eup %2530 }
 0x3a2   :  { %v2533_v1 = vpop.eup %2532  ;;  %v497_v4 = vadd.f32 1.0, %v2531_v0 }
 0x3a3   :  { %v399_v8 = vadd.f32 1.0, %v2533_v1  ;;  %v2535_v10 = vpop.eup %2534 }
 0x3a4   :  { %2538 = vrcp.f32 %v497_v4  ;;  %v2537_v11 = vpop.eup %2536 }
 0x3a5   :  { %2540 = vrcp.f32 %v399_v8 }
 0x3b1   :  { %v2539_v12 = vpop.eup %2538 }
 0x3b2   :  { %v2541_v13 = vpop.eup %2540  ;;  %v500_v14 = vsel %vm2823_vm5, %v2535_v10, %v2539_v12 }
 0x3b3   :  { %503 = vrot.lane.b32.xlu1 %v500_v14, %s2692_s18  ;;  %v402_v15 = vsel %vm2823_vm5, %v2537_v11, %v2541_v13  ;;  %v501_v21 = vmul.f32 %v500_v14, %v2831_v28 }
 0x3b4   :  { %405 = vrot.lane.b32.xlu0 %v402_v15, %s2692_s18  ;;  %v403_v23 = vmul.f32 0.0, %v402_v15 }
 0x425   :  { %v504_v16 = vpop.permute.xlu1 %503 }
 0x426   :  { %v506_v17 = vmul.f32 %v504_v16, %v500_v14  ;;  %v406_v18 = vpop.permute.xlu0 %405 }
 0x427   :  { %v408_v19 = vmul.f32 %v406_v18, %v402_v15 }
 0x428   :  { %508 = vrot.lane.b32.xlu1 %v506_v17, %s2693_s19 }
 0x429   :  { %410 = vrot.lane.b32.xlu0 %v408_v19, %s2693_s19 }
 0x49a   :  { %v509_v22 = vpop.permute.xlu1 %508 }
 0x49b   :  { %v2978_v24 = vadd.f32 %v509_v22, %v501_v21  ;;  %v411_v25 = vpop.permute.xlu0 %410 }
 0x49c   :  { %v2980_v26 = vadd.f32 %v411_v25, %v403_v23 }
 0x49d   :  { %2542 = vtanh.f32 %v2978_v24 }
 0x49e   :  { %2544 = vtanh.f32 %v2980_v26 }
 0x4aa   :  { %v2543_v27 = vpop.eup %2542 }
 0x4ab   :  { %v2545_v30 = vpop.eup %2544  ;;  %514 = vrot.lane.b32.xlu1 %v2543_v27, %s2692_s18 }
 0x4ac   :  { %416 = vrot.lane.b32.xlu0 %v2545_v30, %s2692_s18 }
 0x51d   :  { %v515_v31 = vpop.permute.xlu1 %514 }
 0x51e   :  { %v517_v33 = vmul.f32 %v515_v31, %v500_v14  ;;  %v417_v28 = vpop.permute.xlu0 %416 }
 0x51f   :  { %v419_v35 = vmul.f32 %v417_v28, %v402_v15  ;;  %v169_v28 = vadd.f32 %v2949_v48, %v2820_v9 }
 0x520   :  { %519 = vrot.lane.b32.xlu0 %v517_v33, %s2693_s19 }
 0x521   :  { %523 = vrot.lane.b32.xlu1 %v419_v35, %s2692_s18 }
 0x592   :  { %v520_v37 = vpop.permute.xlu0 %519 }
 0x593   :  { %v524_v39 = vpop.permute.xlu1 %523  ;;  %2327 = vmatmul.mubr.msk.f32.vlgmr.msra.gmra.mxu0 %vm216_vm6, %v520_v37 }
 0x594   :  { %v526_v41 = vsel %vm216_vm6, %v520_v37, %v524_v39  ;;  %2330 = vmatpush3.msra.mxu0 %v2837_v29  ;;  %2345 = vmatprep.mubr.msk.f32.mxu0 %vm2691_vm2, %v2690_v2 }
 0x595   :  { %2316 = vmatmul.mubr.msk.f32.vlgmr.msra.gmra.mxu1 %vm321_vm7, %v526_v41  ;;  %2331 = vmatprep.subr.mxu0 %v2690_v2 }
 0x596   :  { %2332 = vmatpush3.msra.mxu0 %v2850_v32  ;;  %2349 = vmatpush3.msra.mxu1 %v2771_v3 }
 0x597   :  { %2333 = vmatprep.subr.mxu0 %v2690_v2  ;;  %2350 = vmatprep.subr.mxu1 %v2690_v2 }
 0x598   :  { %2334 = vmatpush3.msra.mxu0 %v2860_v34  ;;  %2351 = vmatpush3.msra.mxu1 %v2780_v5 }
 0x599   :  { %2335 = vmatprep.subr.mxu0 %v2690_v2  ;;  %2352 = vmatprep.subr.mxu1 %v2690_v2 }
 0x59a   :  { %2336 = vmatpush3.msra.mxu0 %v2871_v36  ;;  %2353 = vmatpush3.msra.mxu1 %v2788_v6 }
 0x59b   :  { %2337 = vmatprep.subr.mxu0 %v2690_v2  ;;  %2354 = vmatprep.subr.mxu1 %v2690_v2 }
 0x59c   :  { %2338 = vmatpush3.msra.mxu0 %v2882_v38  ;;  %2355 = vmatpush3.msra.mxu1 %v2798_v7 }
 0x59d   :  { %2339 = vmatprep.subr.mxu0 %v2690_v2  ;;  %2356 = vmatprep.mubr.msk.f32.mxu1 %vm2691_vm2, %v2690_v2 }
 0x59e   :  { %2340 = vmatpush3.msra.mxu0 %v2893_v40  ;;  %2359 = vmatprep.subr.mxu1 %v2690_v2 }
 0x59f   :  { %2341 = vmatprep.subr.mxu0 %v2690_v2 }
 0x5a0   :  { %2342 = vmatpush3.msra.mxu0 %v2901_v42 }
 0x5a1   :  { %2343 = vmatprep.subr.mxu0 %v2690_v2 }
 0x5a2   :  { %2344 = vmatpush3.msra.mxu0 %v2909_v43 }
 0x5a3   :  { %2378 = vmatprep.subr.mxu0 %v2690_v2 }
 0x653   :  { %v693_v45 = vpop.f32.mrf.mxu0 }
 0x654   :  { %v697_v46 = vadd.f32 %v693_v45, %v164_v44 }
 0x655   :  { %v596_v47 = vpop.f32.mrf.mxu1  ;;  %v2328_v53 = vpop.f32.mrf.mxu0 }
 0x656   :  { %v2085_v56 = vmul.f32 -1.442695, %v697_v46  ;;  %v597_v57 = vadd.f32 %v2966_v55, %v596_v47 }
 0x657   :  { %v2317_v58 = vpop.f32.mrf.mxu1 }
 0x658   :  { %2546 = vpow2.f32 %v2085_v56  ;;  %v2083_v59 = vmul.f32 -1.442695, %v597_v57 }
 0x65a   :  { %2548 = vpow2.f32 %v2083_v59 }
 0x65b   :  { %2550 = vtanh.f32 %v697_v46 }
 0x665   :  { %v2547_v60 = vpop.eup %2546 }
 0x666   :  { %v702_v61 = vadd.f32 1.0, %v2547_v60 }
 0x667   :  { %v2549_v62 = vpop.eup %2548 }
 0x668   :  { %2552 = vrcp.f32 %v702_v61  ;;  %v604_v63 = vadd.f32 1.0, %v2549_v62  ;;  %v2551_v49 = vpop.eup %2550 }
 0x669   :  { %2554 = vtanh.f32 %v597_v57 }
 0x66a   :  { %2556 = vrcp.f32 %v604_v63 }
 0x675   :  { %v2553_v0 = vpop.eup %2552 }
 0x676   :  { %v2555_v1 = vpop.eup %2554  ;;  %v705_v4 = vsel %vm2823_vm5, %v2551_v49, %v2553_v0 }
 0x677   :  { %v2557_v8 = vpop.eup %2556  ;;  %708 = vrot.lane.b32.xlu1 %v705_v4, %s2692_s18  ;;  %v706_v15 = vmul.f32 %v705_v4, %v2978_v24 }
 0x678   :  { %v607_v10 = vsel %vm2823_vm5, %v2555_v1, %v2557_v8 }
 0x679   :  { %610 = vrot.lane.b32.xlu0 %v607_v10, %s2692_s18  ;;  %v608_v18 = vmul.f32 %v607_v10, %v2980_v26 }
 0x6e9   :  { %v709_v11 = vpop.permute.xlu1 %708 }
 0x6ea   :  { %v711_v12 = vmul.f32 %v709_v11, %v705_v4 }
 0x6eb   :  { %v611_v13 = vpop.permute.xlu0 %610 }
 0x6ec   :  { %v613_v14 = vmul.f32 %v611_v13, %v607_v10  ;;  %713 = vrot.lane.b32.xlu1 %v711_v12, %s2693_s19 }
 0x6ee   :  { %615 = vrot.lane.b32.xlu0 %v613_v14, %s2693_s19 }
 0x75e   :  { %v714_v16 = vpop.permute.xlu1 %713 }
 0x75f   :  { %v3031_v17 = vadd.f32 %v714_v16, %v706_v15 }
 0x760   :  { %v616_v19 = vpop.permute.xlu0 %615 }
 0x761   :  { %2558 = vtanh.f32 %v3031_v17  ;;  %v3035_v21 = vadd.f32 %v616_v19, %v608_v18 }
 0x763   :  { %2560 = vtanh.f32 %v3035_v21 }
 0x76e   :  { %v2559_v22 = vpop.eup %2558 }
 0x76f   :  { %719 = vrot.lane.b32.xlu1 %v2559_v22, %s2692_s18 }
 0x770   :  { %v2561_v23 = vpop.eup %2560 }
 0x771   :  { %621 = vrot.lane.b32.xlu0 %v2561_v23, %s2692_s18 }
 0x7e1   :  { %v720_v25 = vpop.permute.xlu1 %719 }
 0x7e2   :  { %v722_v24 = vmul.f32 %v720_v25, %v705_v4 }
 0x7e3   :  { %v622_v27 = vpop.permute.xlu0 %621 }
 0x7e4   :  { %v624_v30 = vmul.f32 %v622_v27, %v607_v10  ;;  %724 = vrot.lane.b32.xlu0 %v722_v24, %s2693_s19  ;;  %v174_v24 = vadd.f32 %v2820_v9, %v2955_v51 }
 0x7e6   :  { %728 = vrot.lane.b32.xlu1 %v624_v30, %s2692_s18 }
 0x856   :  { %v725_v26 = vpop.permute.xlu0 %724 }
 0x857   :  { %2357 = vmatmul.mubr.msk.f32.vlgmr.msra.gmra.mxu1 %vm216_vm6, %v725_v26 }
 0x858   :  { %v729_v31 = vpop.permute.xlu1 %728  ;;  %2360 = vmatpush3.msra.mxu1 %v2837_v29  ;;  %2375 = vmatprep.mubr.msk.f32.mxu1 %vm2691_vm2, %v2690_v2 }
 0x859   :  { %v731_v33 = vsel %vm216_vm6, %v725_v26, %v729_v31  ;;  %2361 = vmatprep.subr.mxu1 %v2690_v2 }
 0x85a   :  { %2346 = vmatmul.mubr.msk.f32.vlgmr.msra.gmra.mxu0 %vm321_vm7, %v731_v33  ;;  %2362 = vmatpush3.msra.mxu1 %v2850_v32 }
 0x85b   :  { %2363 = vmatprep.subr.mxu1 %v2690_v2  ;;  %2379 = vmatpush3.msra.mxu0 %v2771_v3 }
 0x85c   :  { %2364 = vmatpush3.msra.mxu1 %v2860_v34  ;;  %2380 = vmatprep.subr.mxu0 %v2690_v2 }
 0x85d   :  { %2365 = vmatprep.subr.mxu1 %v2690_v2  ;;  %2381 = vmatpush3.msra.mxu0 %v2780_v5 }
 0x85e   :  { %2366 = vmatpush3.msra.mxu1 %v2871_v36  ;;  %2382 = vmatprep.subr.mxu0 %v2690_v2 }
 0x85f   :  { %2367 = vmatprep.subr.mxu1 %v2690_v2  ;;  %2383 = vmatpush3.msra.mxu0 %v2788_v6 }
 0x860   :  { %2368 = vmatpush3.msra.mxu1 %v2882_v38  ;;  %2384 = vmatprep.subr.mxu0 %v2690_v2 }
 0x861   :  { %2369 = vmatprep.subr.mxu1 %v2690_v2  ;;  %2385 = vmatpush3.msra.mxu0 %v2798_v7 }
 0x862   :  { %2370 = vmatpush3.msra.mxu1 %v2893_v40  ;;  %2386 = vmatprep.mubr.msk.f32.mxu0 %vm2691_vm2, %v2690_v2 }
 0x863   :  { %2371 = vmatprep.subr.mxu1 %v2690_v2  ;;  %2389 = vmatprep.subr.mxu0 %v2690_v2 }
 0x864   :  { %2372 = vmatpush3.msra.mxu1 %v2901_v42 }
 0x865   :  { %2373 = vmatprep.subr.mxu1 %v2690_v2 }
 0x866   :  { %2374 = vmatpush3.msra.mxu1 %v2909_v43 }
 0x867   :  { %2408 = vmatprep.subr.mxu1 %v2690_v2 }
 0x917   :  { %v898_v35 = vpop.f32.mrf.mxu1 }
 0x918   :  { %v902_v37 = vadd.f32 %v898_v35, %v169_v28 }
 0x919   :  { %v2358_v39 = vpop.f32.mrf.mxu1 }
 0x91a   :  { %v2089_v41 = vmul.f32 -1.442695, %v902_v37  ;;  %v801_v44 = vpop.f32.mrf.mxu0 }
 0x91b   :  { %v802_v45 = vadd.f32 %v2966_v55, %v801_v44 }
 0x91c   :  { %2562 = vpow2.f32 %v2089_v41  ;;  %v2347_v46 = vpop.f32.mrf.mxu0 }
 0x91d   :  { %v2087_v47 = vmul.f32 -1.442695, %v802_v45 }
 0x91f   :  { %2564 = vpow2.f32 %v2087_v47 }
 0x920   :  { %2566 = vtanh.f32 %v902_v37 }
 0x929   :  { %v2563_v53 = vpop.eup %2562 }
 0x92a   :  { %v907_v56 = vadd.f32 1.0, %v2563_v53 }
 0x92c   :  { %v2565_v57 = vpop.eup %2564  ;;  %2568 = vrcp.f32 %v907_v56 }
 0x92d   :  { %v809_v58 = vadd.f32 1.0, %v2565_v57  ;;  %2570 = vtanh.f32 %v802_v45  ;;  %v2567_v48 = vpop.eup %2566 }
 0x92f   :  { %2572 = vrcp.f32 %v809_v58 }
 0x939   :  { %v2569_v59 = vpop.eup %2568 }
 0x93a   :  { %v910_v60 = vsel %vm2823_vm5, %v2567_v48, %v2569_v59  ;;  %v2571_v61 = vpop.eup %2570 }
 0x93b   :  { %913 = vrot.lane.b32.xlu1 %v910_v60, %s2692_s18  ;;  %v911_v8 = vmul.f32 %v910_v60, %v3031_v17 }
 0x93c   :  { %v2573_v62 = vpop.eup %2572 }
 0x93d   :  { %v812_v63 = vsel %vm2823_vm5, %v2571_v61, %v2573_v62 }
 0x93e   :  { %815 = vrot.lane.b32.xlu0 %v812_v63, %s2692_s18  ;;  %v813_v12 = vmul.f32 %v812_v63, %v3035_v21 }
 0x9ad   :  { %v914_v49 = vpop.permute.xlu1 %913 }
 0x9ae   :  { %v916_v0 = vmul.f32 %v914_v49, %v910_v60 }
 0x9b0   :  { %918 = vrot.lane.b32.xlu1 %v916_v0, %s2693_s19  ;;  %v816_v1 = vpop.permute.xlu0 %815 }
 0x9b1   :  { %v818_v4 = vmul.f32 %v816_v1, %v812_v63 }
 0x9b3   :  { %820 = vrot.lane.b32.xlu0 %v818_v4, %s2693_s19 }
 0xa22   :  { %v919_v10 = vpop.permute.xlu1 %918 }
 0xa23   :  { %v3085_v11 = vadd.f32 %v919_v10, %v911_v8 }
 0xa25   :  { %2574 = vtanh.f32 %v3085_v11  ;;  %v821_v13 = vpop.permute.xlu0 %820 }
 0xa26   :  { %v3089_v14 = vadd.f32 %v821_v13, %v813_v12 }
 0xa28   :  { %2576 = vtanh.f32 %v3089_v14 }
 0xa32   :  { %v2575_v15 = vpop.eup %2574 }
 0xa33   :  { %924 = vrot.lane.b32.xlu1 %v2575_v15, %s2692_s18 }
 0xa35   :  { %v2577_v16 = vpop.eup %2576 }
 0xa36   :  { %826 = vrot.lane.b32.xlu0 %v2577_v16, %s2692_s18 }
 0xaa5   :  { %v925_v18 = vpop.permute.xlu1 %924 }
 0xaa6   :  { %v927_v17 = vmul.f32 %v925_v18, %v910_v60 }
 0xaa8   :  { %929 = vrot.lane.b32.xlu0 %v927_v17, %s2693_s19  ;;  %v827_v19 = vpop.permute.xlu0 %826 }
 0xaa9   :  { %v829_v22 = vmul.f32 %v827_v19, %v812_v63 }
 0xaab   :  { %933 = vrot.lane.b32.xlu1 %v829_v22, %s2692_s18 }
 0xb1a   :  { %v930_v21 = vpop.permute.xlu0 %929 }
 0xb1b   :  { %2387 = vmatmul.mubr.msk.f32.vlgmr.msra.gmra.mxu0 %vm216_vm6, %v930_v21 }
 0xb1c   :  { %2390 = vmatpush3.msra.mxu0 %v2837_v29  ;;  %2405 = vmatprep.mubr.msk.f32.mxu0 %vm2691_vm2, %v2690_v2 }
 0xb1d   :  { %v934_v23 = vpop.permute.xlu1 %933  ;;  %2391 = vmatprep.subr.mxu0 %v2690_v2 }
 0xb1e   :  { %v936_v25 = vsel %vm216_vm6, %v930_v21, %v934_v23  ;;  %2392 = vmatpush3.msra.mxu0 %v2850_v32 }
 0xb1f   :  { %2376 = vmatmul.mubr.msk.f32.vlgmr.msra.gmra.mxu1 %vm321_vm7, %v936_v25  ;;  %2393 = vmatprep.subr.mxu0 %v2690_v2 }
 0xb20   :  { %2409 = vmatpush3.msra.mxu1 %v2771_v3  ;;  %2394 = vmatpush3.msra.mxu0 %v2860_v34 }
 0xb21   :  { %2410 = vmatprep.subr.mxu1 %v2690_v2  ;;  %2395 = vmatprep.subr.mxu0 %v2690_v2 }
 0xb22   :  { %2411 = vmatpush3.msra.mxu1 %v2780_v5  ;;  %2396 = vmatpush3.msra.mxu0 %v2871_v36 }
 0xb23   :  { %2412 = vmatprep.subr.mxu1 %v2690_v2  ;;  %2397 = vmatprep.subr.mxu0 %v2690_v2 }
 0xb24   :  { %2413 = vmatpush3.msra.mxu1 %v2788_v6  ;;  %2398 = vmatpush3.msra.mxu0 %v2882_v38 }
 0xb25   :  { %2414 = vmatprep.subr.mxu1 %v2690_v2  ;;  %2399 = vmatprep.subr.mxu0 %v2690_v2 }
 0xb26   :  { %2415 = vmatpush3.msra.mxu1 %v2798_v7  ;;  %2416 = vmatprep.mubr.msk.f32.mxu1 %vm2691_vm2, %v2690_v2 }
 0xb27   :  { %2400 = vmatpush3.msra.mxu0 %v2893_v40  ;;  %2419 = vmatprep.subr.mxu1 %v2690_v2 }
 0xb28   :  { %2401 = vmatprep.subr.mxu0 %v2690_v2 }
 0xb29   :  { %2402 = vmatpush3.msra.mxu0 %v2901_v42 }
 0xb2a   :  { %2403 = vmatprep.subr.mxu0 %v2690_v2 }
 0xb2b   :  { %2404 = vmatpush3.msra.mxu0 %v2909_v43 }
 0xb2c   :  { %2438 = vmatprep.subr.mxu0 %v2690_v2 }
 0xbdb   :  { %v1103_v27 = vpop.f32.mrf.mxu0 }
 0xbdc   :  { %v1107_v30 = vadd.f32 %v1103_v27, %v174_v24 }
 0xbdd   :  { %v2388_v26 = vpop.f32.mrf.mxu0 }
 0xbde   :  { %v2093_v31 = vmul.f32 -1.442695, %v1107_v30 }
 0xbdf   :  { %v1006_v33 = vpop.f32.mrf.mxu1 }
 0xbe0   :  { %2578 = vpow2.f32 %v2093_v31  ;;  %v1007_v28 = vadd.f32 %v2966_v55, %v1006_v33 }
 0xbe1   :  { %v2377_v35 = vpop.f32.mrf.mxu1 }
 0xbe2   :  { %v2091_v37 = vmul.f32 -1.442695, %v1007_v28 }
 0xbe4   :  { %2580 = vpow2.f32 %v2091_v37 }
 0xbe5   :  { %2582 = vtanh.f32 %v1107_v30 }
 0xbed   :  { %v2579_v39 = vpop.eup %2578 }
 0xbee   :  { %v1112_v41 = vadd.f32 1.0, %v2579_v39 }
 0xbf0   :  { %2584 = vrcp.f32 %v1112_v41 }
 0xbf1   :  { %v2581_v44 = vpop.eup %2580  ;;  %2586 = vtanh.f32 %v1007_v28 }
 0xbf2   :  { %v1014_v45 = vadd.f32 1.0, %v2581_v44  ;;  %v2583_v51 = vpop.eup %2582 }
 0xbf4   :  { %2588 = vrcp.f32 %v1014_v45 }
 0xbfd   :  { %v2585_v46 = vpop.eup %2584 }
 0xbfe   :  { %v1115_v47 = vsel %vm2823_vm5, %v2583_v51, %v2585_v46  ;;  %v2587_v53 = vpop.eup %2586 }
 0xbff   :  { %1118 = vrot.lane.b32.xlu1 %v1115_v47, %s2692_s18  ;;  %v1116_v61 = vmul.f32 %v1115_v47, %v3085_v11 }
 0xc01   :  { %v2589_v56 = vpop.eup %2588 }
 0xc02   :  { %v1017_v57 = vsel %vm2823_vm5, %v2587_v53, %v2589_v56 }
 0xc03   :  { %1020 = vrot.lane.b32.xlu0 %v1017_v57, %s2692_s18  ;;  %v1018_v49 = vmul.f32 %v1017_v57, %v3089_v14 }
 0xc71   :  { %v1119_v58 = vpop.permute.xlu1 %1118 }
 0xc72   :  { %v1121_v48 = vmul.f32 %v1119_v58, %v1115_v47 }
 0xc74   :  { %1123 = vrot.lane.b32.xlu1 %v1121_v48, %s2693_s19 }
 0xc75   :  { %v1021_v59 = vpop.permute.xlu0 %1020 }
 0xc76   :  { %v1023_v60 = vmul.f32 %v1021_v59, %v1017_v57 }
 0xc78   :  { %1025 = vrot.lane.b32.xlu0 %v1023_v60, %s2693_s19 }
 0xce6   :  { %v1124_v62 = vpop.permute.xlu1 %1123 }
 0xce7   :  { %v3139_v63 = vadd.f32 %v1124_v62, %v1116_v61 }
 0xce9   :  { %2590 = vtanh.f32 %v3139_v63 }
 0xcea   :  { %v1026_v0 = vpop.permute.xlu0 %1025 }
 0xceb   :  { %v3143_v1 = vadd.f32 %v1026_v0, %v1018_v49 }
 0xced   :  { %2592 = vtanh.f32 %v3143_v1 }
 0xcf6   :  { %v2591_v4 = vpop.eup %2590 }
 0xcf7   :  { %1129 = vrot.lane.b32.xlu1 %v2591_v4, %s2692_s18 }
 0xcfa   :  { %v2593_v8 = vpop.eup %2592 }
 0xcfb   :  { %1031 = vrot.lane.b32.xlu0 %v2593_v8, %s2692_s18 }
 0xd69   :  { %v1130_v10 = vpop.permute.xlu1 %1129 }
 0xd6a   :  { %v1132_v11 = vmul.f32 %v1130_v10, %v1115_v47 }
 0xd6c   :  { %1134 = vrot.lane.b32.xlu0 %v1132_v11, %s2693_s19 }
 0xd6d   :  { %v1032_v12 = vpop.permute.xlu0 %1031 }
 0xd6e   :  { %v1034_v13 = vmul.f32 %v1032_v12, %v1017_v57 }
 0xd70   :  { %1138 = vrot.lane.b32.xlu1 %v1034_v13, %s2692_s18 }
 0xdde   :  { %v1135_v14 = vpop.permute.xlu0 %1134 }
 0xddf   :  { %2417 = vmatmul.mubr.msk.f32.vlgmr.msra.gmra.mxu1 %vm216_vm6, %v1135_v14 }
 0xde0   :  { %2420 = vmatpush3.msra.mxu1 %v2837_v29  ;;  %2435 = vmatprep.mubr.msk.f32.mxu1 %vm2691_vm2, %v2690_v2 }
 0xde1   :  { %2421 = vmatprep.subr.mxu1 %v2690_v2 }
 0xde2   :  { %v1139_v15 = vpop.permute.xlu1 %1138  ;;  %2422 = vmatpush3.msra.mxu1 %v2850_v32 }
 0xde3   :  { %v1141_v16 = vsel %vm216_vm6, %v1135_v14, %v1139_v15  ;;  %2423 = vmatprep.subr.mxu1 %v2690_v2 }
 0xde4   :  { %2406 = vmatmul.mubr.msk.f32.vlgmr.msra.gmra.mxu0 %vm321_vm7, %v1141_v16  ;;  %2424 = vmatpush3.msra.mxu1 %v2860_v34 }
 0xde5   :  { %2439 = vmatpush3.msra.mxu0 %v2771_v3  ;;  %2425 = vmatprep.subr.mxu1 %v2690_v2  ;;  %v179_v3 = vadd.f32 %v2953_v50, %v2820_v9 }
 0xde6   :  { %2440 = vmatprep.subr.mxu0 %v2690_v2  ;;  %2426 = vmatpush3.msra.mxu1 %v2871_v36 }
 0xde7   :  { %2441 = vmatpush3.msra.mxu0 %v2780_v5  ;;  %2427 = vmatprep.subr.mxu1 %v2690_v2 }
 0xde8   :  { %2442 = vmatprep.subr.mxu0 %v2690_v2  ;;  %2428 = vmatpush3.msra.mxu1 %v2882_v38 }
 0xde9   :  { %2443 = vmatpush3.msra.mxu0 %v2788_v6  ;;  %2446 = vmatprep.mubr.msk.f32.mxu0 %vm2691_vm2, %v2690_v2 }
 0xdea   :  { %2444 = vmatprep.subr.mxu0 %v2690_v2  ;;  %2429 = vmatprep.subr.mxu1 %v2690_v2 }
 0xdeb   :  { %2445 = vmatpush3.msra.mxu0 %v2798_v7  ;;  %2430 = vmatpush3.msra.mxu1 %v2893_v40 }
 0xdec   :  { %2431 = vmatprep.subr.mxu1 %v2690_v2  ;;  %2449 = vmatprep.subr.mxu0 %v2690_v2 }
 0xded   :  { %2432 = vmatpush3.msra.mxu1 %v2901_v42 }
 0xdee   :  { %2433 = vmatprep.subr.mxu1 %v2690_v2 }
 0xdef   :  { %2434 = vmatpush3.msra.mxu1 %v2909_v43 }
 0xdf0   :  { %2468 = vmatprep.subr.mxu1 %v2690_v2 }
 0xe9f   :  { %v1308_v5 = vpop.f32.mrf.mxu1 }
 0xea0   :  { %v1312_v6 = vadd.f32 %v1308_v5, %v179_v3 }
 0xea1   :  { %v2418_v7 = vpop.f32.mrf.mxu1 }
 0xea2   :  { %v2097_v18 = vmul.f32 -1.442695, %v1312_v6 }
 0xea4   :  { %2594 = vpow2.f32 %v2097_v18  ;;  %v1211_v17 = vpop.f32.mrf.mxu0 }
 0xea5   :  { %v1212_v19 = vadd.f32 %v2966_v55, %v1211_v17 }
 0xea6   :  { %v2407_v22 = vpop.f32.mrf.mxu0 }
 0xea7   :  { %v2095_v21 = vmul.f32 -1.442695, %v1212_v19 }
 0xea9   :  { %2596 = vpow2.f32 %v2095_v21 }
 0xeaa   :  { %2598 = vtanh.f32 %v1312_v6 }
 0xeb1   :  { %v2595_v23 = vpop.eup %2594 }
 0xeb2   :  { %v1317_v25 = vadd.f32 1.0, %v2595_v23 }
 0xeb4   :  { %2600 = vrcp.f32 %v1317_v25 }
 0xeb5   :  { %2602 = vtanh.f32 %v1212_v19 }
 0xeb6   :  { %v2597_v24 = vpop.eup %2596 }
 0xeb7   :  { %v1219_v27 = vadd.f32 1.0, %v2597_v24  ;;  %v2599_v9 = vpop.eup %2598 }
 0xeb9   :  { %2604 = vrcp.f32 %v1219_v27 }
 0xec1   :  { %v2601_v50 = vpop.eup %2600 }
 0xec2   :  { %v1320_v30 = vsel %vm2823_vm5, %v2599_v9, %v2601_v50  ;;  %v2603_v26 = vpop.eup %2602 }
 0xec3   :  { %1323 = vrot.lane.b32.xlu1 %v1320_v30, %s2692_s18  ;;  %v1321_v41 = vmul.f32 %v1320_v30, %v3139_v63 }
 0xec6   :  { %v2605_v31 = vpop.eup %2604 }
 0xec7   :  { %v1222_v33 = vsel %vm2823_vm5, %v2603_v26, %v2605_v31 }
 0xec8   :  { %1225 = vrot.lane.b32.xlu0 %v1222_v33, %s2692_s18  ;;  %v1223_v51 = vmul.f32 %v1222_v33, %v3143_v1 }
 0xf35   :  { %v1324_v28 = vpop.permute.xlu1 %1323 }
 0xf36   :  { %v1326_v35 = vmul.f32 %v1324_v28, %v1320_v30  ;;  %v2659_v28 = vld [vmem:[%s3382_s4 + $0x38] sm:$0xff] }
 0xf38   :  { %1328 = vrot.lane.b32.xlu1 %v1326_v35, %s2693_s19  ;;  %v2660_v35 = vld [vmem:[%s3382_s4 + $0x30] sm:$0xff] }
 0xf3a   :  { %v1226_v37 = vpop.permute.xlu0 %1225 }
 0xf3b   :  { %v1228_v39 = vmul.f32 %v1226_v37, %v1222_v33 }
 0xf3d   :  { %1230 = vrot.lane.b32.xlu0 %v1228_v39, %s2693_s19  ;;  %v2661_v39 = vld [vmem:[%s3382_s4 + $0x28] sm:$0xff] }
 0xfaa   :  { %v1329_v44 = vpop.permute.xlu1 %1328 }
 0xfab   :  { %v3193_v45 = vadd.f32 %v1329_v44, %v1321_v41  ;;  %v2662_v44 = vld [vmem:[%s3382_s4 + $0x20] sm:$0xff] }
 0xfad   :  { %2606 = vtanh.f32 %v3193_v45 }
 0xfaf   :  { %v1231_v46 = vpop.permute.xlu0 %1230 }
 0xfb0   :  { %v3197_v47 = vadd.f32 %v1231_v46, %v1223_v51  ;;  %v2664_v51 = vld [vmem:[%s3382_s4 + $0x10] sm:$0xff]  ;;  %v2665_v46 = vld [vmem:[%s3382_s4 + $0x8] sm:$0xff] }
 0xfb2   :  { %2608 = vtanh.f32 %v3197_v47 }
 0xfba   :  { %v2607_v53 = vpop.eup %2606 }
 0xfbb   :  { %1334 = vrot.lane.b32.xlu1 %v2607_v53, %s2692_s18 }
 0xfbf   :  { %v2609_v56 = vpop.eup %2608 }
 0xfc0   :  { %1236 = vrot.lane.b32.xlu0 %v2609_v56, %s2692_s18 }
0x102d   :  { %v1335_v57 = vpop.permute.xlu1 %1334 }
0x102e   :  { %v1337_v58 = vmul.f32 %v1335_v57, %v1320_v30 }
0x1030   :  { %1339 = vrot.lane.b32.xlu0 %v1337_v58, %s2693_s19 }
0x1032   :  { %v1237_v48 = vpop.permute.xlu0 %1236 }
0x1033   :  { %v1239_v59 = vmul.f32 %v1237_v48, %v1222_v33 }
0x1035   :  { %1343 = vrot.lane.b32.xlu1 %v1239_v59, %s2692_s18 }
0x10a2   :  { %v1340_v60 = vpop.permute.xlu0 %1339 }
0x10a3   :  { %2447 = vmatmul.mubr.msk.f32.vlgmr.msra.gmra.mxu0 %vm216_vm6, %v1340_v60 }
0x10a4   :  { %2450 = vmatpush3.msra.mxu0 %v2837_v29  ;;  %2465 = vmatprep.mubr.msk.f32.mxu0 %vm2691_vm2, %v2690_v2  ;;  %v2654_v29 = vld [vmem:[%s3380_s2 + $0x18] sm:$0xff] }
0x10a5   :  { %2451 = vmatprep.subr.mxu0 %v2690_v2 }
0x10a6   :  { %2452 = vmatpush3.msra.mxu0 %v2850_v32  ;;  %v2655_v32 = vld [vmem:[%s3380_s2 + $0x10] sm:$0xff] }
0x10a7   :  { %v1344_v61 = vpop.permute.xlu1 %1343  ;;  %2453 = vmatprep.subr.mxu0 %v2690_v2 }
0x10a8   :  { %v1346_v62 = vsel %vm216_vm6, %v1340_v60, %v1344_v61  ;;  %2454 = vmatpush3.msra.mxu0 %v2860_v34  ;;  %v2656_v34 = vld [vmem:[%s3380_s2 + $0x8] sm:$0xff] }
0x10a9   :  { %2436 = vmatmul.mubr.msk.f32.vlgmr.msra.gmra.mxu1 %vm321_vm7, %v1346_v62  ;;  %2455 = vmatprep.subr.mxu0 %v2690_v2 }
0x10aa   :  { %2469 = vmatpush3.msra.mxu1 %v2654_v29  ;;  %2456 = vmatpush3.msra.mxu0 %v2871_v36  ;;  %v2657_v36 = vld [vmem:[%s3380_s2] sm:$0xff] }
0x10ab   :  { %2470 = vmatprep.subr.mxu1 %v2690_v2  ;;  %2457 = vmatprep.subr.mxu0 %v2690_v2 }
0x10ac   :  { %2471 = vmatpush3.msra.mxu1 %v2655_v32  ;;  %2476 = vmatprep.mubr.msk.f32.mxu1 %vm2691_vm2, %v2690_v2 }
0x10ad   :  { %2472 = vmatprep.subr.mxu1 %v2690_v2  ;;  %2458 = vmatpush3.msra.mxu0 %v2882_v38  ;;  %v3246_v38 = vld [vmem:[%s3381_s3] ss:$0 sm:$0xff] }
0x10ae   :  { %2473 = vmatpush3.msra.mxu1 %v2656_v34  ;;  %2459 = vmatprep.subr.mxu0 %v2690_v2  ;;  %v189_v53 = vadd.f32 %v3246_v38, %v2957_v52 }
0x10af   :  { %2474 = vmatprep.subr.mxu1 %v2690_v2  ;;  %2460 = vmatpush3.msra.mxu0 %v2893_v40  ;;  %v184_v40 = vadd.f32 %v3246_v38, %v2961_v54 }
0x10b0   :  { %2475 = vmatpush3.msra.mxu1 %v2657_v36  ;;  %2461 = vmatprep.subr.mxu0 %v2690_v2 }
0x10b1   :  { %2462 = vmatpush3.msra.mxu0 %v2901_v42  ;;  %2479 = vmatprep.subr.mxu1 %v2690_v2 }
0x10b2   :  { %2463 = vmatprep.subr.mxu0 %v2690_v2 }
0x10b3   :  { %2464 = vmatpush3.msra.mxu0 %v2909_v43 }
0x10b4   :  { %2498 = vmatprep.subr.mxu0 %v2690_v2 }
0x1163   :  { %v1513_v63 = vpop.f32.mrf.mxu0 }
0x1164   :  { %v1517_v49 = vadd.f32 %v1513_v63, %v184_v40 }
0x1165   :  { %v2448_v0 = vpop.f32.mrf.mxu0 }
0x1166   :  { %v2101_v42 = vmul.f32 -1.442695, %v1517_v49 }
0x1168   :  { %2610 = vpow2.f32 %v2101_v42 }
0x1169   :  { %v1416_v1 = vpop.f32.mrf.mxu1 }
0x116a   :  { %v1417_v4 = vadd.f32 %v2966_v55, %v1416_v1 }
0x116b   :  { %v2437_v8 = vpop.f32.mrf.mxu1 }
0x116c   :  { %v2099_v43 = vmul.f32 -1.442695, %v1417_v4 }
0x116e   :  { %2612 = vpow2.f32 %v2099_v43 }
0x116f   :  { %2614 = vtanh.f32 %v1517_v49 }
0x1175   :  { %v2611_v10 = vpop.eup %2610 }
0x1176   :  { %v1522_v11 = vadd.f32 1.0, %v2611_v10 }
0x1178   :  { %2616 = vrcp.f32 %v1522_v11 }
0x1179   :  { %2618 = vtanh.f32 %v1417_v4 }
0x117b   :  { %v2613_v12 = vpop.eup %2612 }
0x117c   :  { %v1424_v13 = vadd.f32 1.0, %v2613_v12  ;;  %v2615_v54 = vpop.eup %2614 }
0x117e   :  { %2620 = vrcp.f32 %v1424_v13 }
0x1185   :  { %v2617_v14 = vpop.eup %2616 }
0x1186   :  { %v1525_v15 = vsel %vm2823_vm5, %v2615_v54, %v2617_v14  ;;  %v2619_v16 = vpop.eup %2618 }
0x1187   :  { %1528 = vrot.lane.b32.xlu1 %v1525_v15, %s2692_s18  ;;  %v1526_v19 = vmul.f32 %v1525_v15, %v3193_v45  ;;  %v2663_v45 = vld [vmem:[%s3382_s4 + $0x18] sm:$0xff] }
0x118b   :  { %v2621_v3 = vpop.eup %2620 }
0x118c   :  { %v1427_v5 = vsel %vm2823_vm5, %v2619_v16, %v2621_v3 }
0x118d   :  { %1430 = vrot.lane.b32.xlu0 %v1427_v5, %s2692_s18  ;;  %v1428_v23 = vmul.f32 %v1427_v5, %v3197_v47  ;;  %v2666_v47 = vld [vmem:[%s3382_s4] sm:$0xff] }
0x11f9   :  { %v1529_v6 = vpop.permute.xlu1 %1528 }
0x11fa   :  { %v1531_v7 = vmul.f32 %v1529_v6, %v1525_v15 }
0x11fc   :  { %1533 = vrot.lane.b32.xlu1 %v1531_v7, %s2693_s19 }
0x11ff   :  { %v1431_v18 = vpop.permute.xlu0 %1430 }
0x1200   :  { %v1433_v17 = vmul.f32 %v1431_v18, %v1427_v5 }
0x1202   :  { %1435 = vrot.lane.b32.xlu0 %v1433_v17, %s2693_s19 }
0x126e   :  { %v1534_v22 = vpop.permute.xlu1 %1533 }
0x126f   :  { %v3260_v21 = vadd.f32 %v1534_v22, %v1526_v19  ;;  %v2667_v19 = vld [vmem:[%s3383_s5] ss:$0 sm:$0xff] }
0x1271   :  { %2622 = vtanh.f32 %v3260_v21 }
0x1274   :  { %v1436_v25 = vpop.permute.xlu0 %1435 }
0x1275   :  { %v3264_v24 = vadd.f32 %v1436_v25, %v1428_v23 }
0x1277   :  { %2624 = vtanh.f32 %v3264_v24 }
0x127e   :  { %v2623_v27 = vpop.eup %2622 }
0x127f   :  { %1539 = vrot.lane.b32.xlu1 %v2623_v27, %s2692_s18 }
0x1284   :  { %v2625_v9 = vpop.eup %2624 }
0x1285   :  { %1441 = vrot.lane.b32.xlu0 %v2625_v9, %s2692_s18 }
0x12f1   :  { %v1540_v50 = vpop.permute.xlu1 %1539 }
0x12f2   :  { %v1542_v30 = vmul.f32 %v1540_v50, %v1525_v15 }
0x12f4   :  { %1544 = vrot.lane.b32.xlu0 %v1542_v30, %s2693_s19 }
0x12f7   :  { %v1442_v26 = vpop.permute.xlu0 %1441 }
0x12f8   :  { %v1444_v31 = vmul.f32 %v1442_v26, %v1427_v5 }
0x12fa   :  { %1548 = vrot.lane.b32.xlu1 %v1444_v31, %s2692_s18  ;;  %v2108_v31 = vld [vmem:[%s3384_s6] ss:$0 sm:$0xff] }
0x1366   :  { %v1545_v33 = vpop.permute.xlu0 %1544 }
0x1367   :  { %2477 = vmatmul.mubr.msk.f32.vlgmr.msra.gmra.mxu1 %vm216_vm6, %v1545_v33 }
0x1368   :  { %2480 = vmatpush3.msra.mxu1 %v2659_v28  ;;  %2495 = vmatprep.mubr.msk.f32.mxu1 %vm2691_vm2, %v2690_v2 }
0x1369   :  { %2481 = vmatprep.subr.mxu1 %v2690_v2 }
0x136a   :  { %2482 = vmatpush3.msra.mxu1 %v2660_v35 }
0x136b   :  { %2483 = vmatprep.subr.mxu1 %v2690_v2 }
0x136c   :  { %v1549_v37 = vpop.permute.xlu1 %1548  ;;  %2484 = vmatpush3.msra.mxu1 %v2661_v39  ;;  %v1876_v39 = vld [vmem:[%s3386_s8 + $0x8] sm:$0xff] }
0x136d   :  { %v1551_v41 = vsel %vm216_vm6, %v1545_v33, %v1549_v37  ;;  %2485 = vmatprep.subr.mxu1 %v2690_v2  ;;  %v1877_v37 = vld [vmem:[%s3386_s8 + $0x10] sm:$0xff] }
0x136e   :  { %2466 = vmatmul.mubr.msk.f32.vlgmr.msra.gmra.mxu0 %vm321_vm7, %v1551_v41  ;;  %2486 = vmatpush3.msra.mxu1 %v2662_v44  ;;  %v1875_v41 = vld [vmem:[%s3386_s8] sm:$0xff] }
0x136f   :  { %2487 = vmatprep.subr.mxu1 %v2690_v2  ;;  %2506 = vmatprep.mubr.msk.f32.mxu0 %vm2691_vm2, %v2690_v2 }
0x1370   :  { %2488 = vmatpush3.msra.mxu1 %v2663_v45  ;;  %2499 = vmatpush3.msra.mxu0 %v1878_v20  ;;  %v2109_v45 = vld [vmem:[%s3385_s7] ss:$0 sm:$0xff] }
0x1371   :  { %2489 = vmatprep.subr.mxu1 %v2690_v2  ;;  %2500 = vmatprep.subr.mxu0 %v2690_v2 }
0x1372   :  { %2490 = vmatpush3.msra.mxu1 %v2664_v51  ;;  %2501 = vmatpush3.msra.mxu0 %v1877_v37 }
0x1373   :  { %2491 = vmatprep.subr.mxu1 %v2690_v2  ;;  %2502 = vmatprep.subr.mxu0 %v2690_v2 }
0x1374   :  { %2492 = vmatpush3.msra.mxu1 %v2665_v46  ;;  %2503 = vmatpush3.msra.mxu0 %v1876_v39 }
0x1375   :  { %2493 = vmatprep.subr.mxu1 %v2690_v2  ;;  %2504 = vmatprep.subr.mxu0 %v2690_v2 }
0x1376   :  { %2494 = vmatpush3.msra.mxu1 %v2666_v47  ;;  %2505 = vmatpush3.msra.mxu0 %v1875_v41 }
0x1377   :  { %2509 = vmatprep.subr.mxu0 %v2690_v2 }
0x1427   :  { %v1718_v56 = vpop.f32.mrf.mxu1 }
0x1428   :  { %v1722_v57 = vadd.f32 %v1718_v56, %v189_v53 }
0x1429   :  { %v2478_v58 = vpop.f32.mrf.mxu1 }
0x142a   :  { %v2105_v48 = vmul.f32 -1.442695, %v1722_v57 }
0x142c   :  { %2626 = vpow2.f32 %v2105_v48  ;;  %v1963_v48 = vld [vmem:[%s3388_s10 + $0x8] sm:$0xff] }
0x142e   :  { %v1621_v59 = vpop.f32.mrf.mxu0 }
0x142f   :  { %v1622_v60 = vadd.f32 %v2966_v55, %v1621_v59  ;;  %v1962_v59 = vld [vmem:[%s3388_s10] sm:$0xff]  ;;  %s2695_s10 = smov [#allocation2]  }
0x1430   :  { %v2467_v61 = vpop.f32.mrf.mxu0 }
0x1431   :  { %v2103_v62 = vmul.f32 -1.442695, %v1622_v60 }
0x1433   :  { %2628 = vpow2.f32 %v2103_v62 }
0x1434   :  { %2630 = vtanh.f32 %v1722_v57 }
0x1439   :  { %v2627_v29 = vpop.eup %2626 }
0x143a   :  { %v1727_v32 = vadd.f32 1.0, %v2627_v29 }
0x143c   :  { %2632 = vrcp.f32 %v1727_v32 }
0x143d   :  { %2634 = vtanh.f32 %v1622_v60  ;;  %v2110_v60 = vld [vmem:[%s3387_s9] ss:$0 sm:$0xff]  ;;  %s2058_s9 = sshll.u32 %s2695_s10, 4  ;;  %s2059_s9 = int_to_ptr.vmem [resolvable:$true] %s2058_s9 }
0x143e   :  { %s2668_s15 = scalar_lea.vmem %s2059_s9, 128  ;;  %p2673_p1 = scmp.lt.s32.totalorder %s2059_s9, %s2059_s9 }
0x143f   :  { %p2669_p0 = scmp.ne.s32.totalorder %s2059_s9, %s2668_s15  ;;  %p2674_p2 = scmp.lt.s32.totalorder %s2668_s15, %s2668_s15 }
0x1440   :  { %v2629_v34 = vpop.eup %2628 }
0x1441   :  { %v1629_v36 = vadd.f32 1.0, %v2629_v34  ;;  %v2631_v52 = vpop.eup %2630  ;;  %v2112_v34 = vld [vmem:[%s3389_s11] ss:$0 sm:$0xff]  ;;  %p2675_p3 = por %p2674_p2, %p2673_p1 }
0x1443   :  { %2636 = vrcp.f32 %v1629_v36  ;;  %p2676_p4 = pnand %p2675_p3, %p2669_p0 }
0x1449   :  { %v2633_v38 = vpop.eup %2632 }
0x144a   :  { %v1730_v40 = vsel %vm2823_vm5, %v2631_v52, %v2633_v38  ;;  %v2635_v63 = vpop.eup %2634 }
0x144b   :  { %1733 = vrot.lane.b32.xlu1 %v1730_v40, %s2692_s18  ;;  %v1731_v8 = vmul.f32 %v1730_v40, %v3260_v21 }
0x1450   :  { %v2637_v55 = vpop.eup %2636 }
0x1451   :  { %v1632_v49 = vsel %vm2823_vm5, %v2635_v63, %v2637_v55 }
0x1452   :  { %1635 = vrot.lane.b32.xlu0 %v1632_v49, %s2692_s18  ;;  %v1633_v11 = vmul.f32 %v1632_v49, %v3264_v24 }
0x14bd   :  { %v1734_v0 = vpop.permute.xlu1 %1733 }
0x14be   :  { %v1736_v42 = vmul.f32 %v1734_v0, %v1730_v40 }
0x14c0   :  { %1738 = vrot.lane.b32.xlu1 %v1736_v42, %s2693_s19 }
0x14c4   :  { %v1636_v1 = vpop.permute.xlu0 %1635 }
0x14c5   :  { %v1638_v4 = vmul.f32 %v1636_v1, %v1632_v49 }
0x14c7   :  { %1640 = vrot.lane.b32.xlu0 %v1638_v4, %s2693_s19 }
0x1532   :  { %v1739_v43 = vpop.permute.xlu1 %1738 }
0x1533   :  { %v1741_v10 = vadd.f32 %v1739_v43, %v1731_v8 }
0x1535   :  { %2638 = vtanh.f32 %v1741_v10 }
0x1539   :  { %v1641_v12 = vpop.permute.xlu0 %1640 }
0x153a   :  { %v1643_v13 = vadd.f32 %v1641_v12, %v1633_v11 }
0x153c   :  { %2640 = vtanh.f32 %v1643_v13 }
0x1542   :  { %v2639_v54 = vpop.eup %2638 }
0x1543   :  { %1744 = vrot.lane.b32.xlu1 %v2639_v54, %s2692_s18 }
0x1549   :  { %v2641_v14 = vpop.eup %2640 }
0x154a   :  { %1646 = vrot.lane.b32.xlu0 %v2641_v14, %s2692_s18 }
0x15b5   :  { %v1745_v15 = vpop.permute.xlu1 %1744 }
0x15b6   :  { %v1747_v16 = vmul.f32 %v1745_v15, %v1730_v40 }
0x15b8   :  { %1749 = vrot.lane.b32.xlu0 %v1747_v16, %s2693_s19 }
0x15bc   :  { %v1647_v3 = vpop.permute.xlu0 %1646 }
0x15bd   :  { %v1649_v5 = vmul.f32 %v1647_v3, %v1632_v49 }
0x15bf   :  { %1753 = vrot.lane.b32.xlu1 %v1649_v5, %s2692_s18 }
0x162a   :  { %v1750_v6 = vpop.permute.xlu0 %1749 }
0x1631   :  { %v1754_v7 = vpop.permute.xlu1 %1753 }
0x1632   :  { %v1756_v18 = vsel %vm216_vm6, %v1750_v6, %v1754_v7 }
0x1633   :  { %2496 = vmatmul.mubr.msk.f32.vlgmr.msra.gmra.mxu1 %vm321_vm7, %v1756_v18 }
0x16f3   :  { %v1826_v17 = vpop.f32.mrf.mxu1 }
0x16f4   :  { %v1827_v22 = vadd.f32 %v2667_v19, %v1826_v17 }
0x16f5   :  { %v2497_v21 = vpop.f32.mrf.mxu1 }
0x16f6   :  { %v2107_v23 = vmul.f32 -1.442695, %v1827_v22 }
0x16f8   :  { %2642 = vpow2.f32 %v2107_v23 }
0x16f9   :  { %2644 = vtanh.f32 %v1827_v22 }
0x1705   :  { %v2643_v25 = vpop.eup %2642 }
0x1706   :  { %v1834_v24 = vadd.f32 1.0, %v2643_v25  ;;  %v2645_v27 = vpop.eup %2644 }
0x1708   :  { %2646 = vrcp.f32 %v1834_v24 }
0x1715   :  { %v2647_v9 = vpop.eup %2646 }
0x1716   :  { %v1837_v50 = vsel %vm2823_vm5, %v2645_v27, %v2647_v9 }
0x1717   :  { %1840 = vrot.lane.b32.xlu0 %v1837_v50, %s2692_s18  ;;  %v1838_v33 = vmul.f32 %v1837_v50, %v1643_v13 }
0x1789   :  { %v1841_v30 = vpop.permute.xlu0 %1840 }
0x178a   :  { %v1843_v26 = vmul.f32 %v1841_v30, %v1837_v50 }
0x178c   :  { %1845 = vrot.lane.b32.xlu1 %v1843_v26, %s2693_s19 }
0x1790   :  { %1861 = vrot.lane.b32.xlu1 %v2108_v31, %s2694_s23 }
0x17fe   :  { %v1846_v28 = vpop.permute.xlu1 %1845 }
0x17ff   :  { %v1848_v35 = vadd.f32 %v1846_v28, %v1838_v33 }
0x1801   :  { %2648 = vtanh.f32 %v1848_v35 }
0x1802   :  { %v1862_v46 = vpop.permute.xlu1 %1861 }
0x180e   :  { %v2649_v44 = vpop.eup %2648 }
0x180f   :  { %1851 = vrot.lane.b32.xlu0 %v2649_v44, %s2692_s18 }
0x1813   :  { %1871 = vrot.lane.b32.xlu0 %v2109_v45, %s2694_s23 }
0x1881   :  { %v1852_v51 = vpop.permute.xlu0 %1851 }
0x1882   :  { %v1854_v47 = vmul.f32 %v1852_v51, %v1837_v50 }
0x1884   :  { %v1864_v53 = vmul.f32 %v1862_v46, %v1854_v47 }
0x1885   :  { %v1872_v56 = vpop.permute.xlu0 %1871 }
0x1886   :  { %v1874_v57 = vadd.f32 %v1872_v56, %v1864_v53 }
0x1888   :  { %1887 = vrot.lane.b32.xlu1 %v1874_v57, %s2693_s19 }
0x18fa   :  { %v1888_v58 = vpop.permute.xlu1 %1887 }
0x18fb   :  { %2507 = vmatmul.mubr.msk.f32.vlgmr.msra.gmra.mxu0 %vm216_vm6, %v1888_v58 }
0x18fc   :  { %2513 = vmatprep.mubr.msk.f32.mxu0 %vm2691_vm2, %v2690_v2  ;;  %2510 = vmatpush3.msra.mxu0 %v1963_v48 }
0x18fd   :  { %2511 = vmatprep.subr.mxu0 %v2690_v2 }
0x18fe   :  { %2512 = vmatpush3.msra.mxu0 %v1962_v59 }
0x19bb   :  { %v1957_v61 = vpop.f32.mrf.mxu0 }
0x19bc   :  { %v1958_v62 = vadd.f32 %v2110_v60, %v1957_v61 }
0x19bd   :  { %v2508_v29 = vpop.f32.mrf.mxu0 }
0x19be   :  { %v1961_v32 = vmax.f32 %v1958_v62, 0.0 }
0x19c0   :  { %2514 = vmatmul.mubr.msk.f32.vlgmr.msra.gmra.mxu0 %vm1971_vm8, %v1961_v32 }
0x1a80   :  { %v2041_v36 = vpop.f32.mrf.mxu0 }
0x1a81   :  { %v2042_v52 = vadd.f32 %v2112_v34, %v2041_v36 }
0x1a82   :  { %v2515_v38 = vpop.f32.mrf.mxu0 }
0x1a83   :  { %v2114_v40 = vmul.f32 -1.442695, %v2042_v52 }
0x1a85   :  { %2650 = vpow2.f32 %v2114_v40 }
0x1a92   :  { %v2651_v2 = vpop.eup %2650 }
0x1a93   :  { %v2048_v63 = vadd.f32 1.0, %v2651_v2 }
0x1a95   :  { %2652 = vrcp.f32 %v2048_v63 }
0x1aa2   :  { %v2653_v55 = vpop.eup %2652 }
0x1aa3   :  { %2051 = vst [vmem:[#allocation2] sm:$0xff] %v2653_v55 }
0x1aa4   :  { %2679 = shalt.err (!%p2676_p4)
}
0x1aa5   :  { %2061 = dma.vmem_to_hbm [thread:$0]  %s2059_s9, 128, %s3390_s12, [#allocation3]  }
0x1aa6   :  { %2688 = dma.done.wait [#allocation3], 128  }
0x1aa7   :  { %2689 = vsyncadd [#allocation3], 4294967168 }
0x1aa8   :  { %2065 = vsyncpa [#allocation3], 1 }

</bundles_post_ra>
